<compile_context>
chip_gen: v6e
topology: v6e:2x2x1
jax: 0.10.0
libtpu: 0.0.40
codegen_flags: <defaults>
</compile_context>

<pallas_src>
import functools
import math

import jax
import jax.numpy as jnp
import numpy as np
from jax import lax
from jax.experimental import pallas as pl
from jax.experimental.pallas import tpu as pltpu


def _round_up(x, m):
    return ((x + m - 1) // m) * m


def _pick_vmem_limit():
    """Generation-aware scoped-VMEM request (v7x: 64 MiB physical, v5e/v6e: 128 MiB)."""
    cap = 64 * 1024 * 1024  # conservative fallback (fits every generation)
    try:
        info = pltpu.get_tpu_info()
        cap = int(getattr(info, "vmem_capacity_bytes", cap)) or cap
    except Exception:
        pass
    # Leave headroom for compiler-internal scratch; never request above 96 MiB.
    return int(min(max(cap - (16 << 20), 32 << 20), 96 << 20))


def _fused_scan_kernel(w_ref, b_ref, x_ref, o_ref, *, compute_dtype, num_chains, unroll):
    """Both directional width scans, fused, for one NH tile.

    w_ref: (Cp, Cp)      effective conv weight, (C_in, C_out) layout, compute_dtype
    b_ref: (1, Cp)       bias (f32)
    x_ref: (W, NHt, Cp)  resident input slab (bf16 on the default path)
    o_ref: (W, NHt, Cp)  resident output slab (f32); doubles as the scan state
    """
    w_cols, nh_t, cp = x_ref.shape
    half = nh_t // num_chains

    # Hoisted once per grid step (JAX does not CSE broadcast_in_dim).
    wmat = w_ref[...]                                                  # (Cp, Cp)
    bias = jnp.broadcast_to(b_ref[...].astype(jnp.float32), (half, cp))

    def _step(prev_f32, cur):
        conv = jnp.dot(prev_f32.astype(compute_dtype), wmat,
                       preferred_element_type=jnp.float32)
        return jnp.maximum(conv + bias, 0.0) + cur.astype(jnp.float32)

    # Left -> right: o[0] = x[0]; o[i] = relu(conv(o[i-1])) + x[i]
    o_ref[0] = x_ref[0].astype(jnp.float32)

    def _fwd(i, _):
        # Two independent row-chains per step: the second MXU push overlaps the
        # first chain's drain + VPU epilogue.
        for k in range(num_chains):
            rows = pl.ds(k * half, half)
            o_ref[i, rows] = _step(o_ref[i - 1, rows], x_ref[i, rows])
        return 0

    lax.fori_loop(1, w_cols, _fwd, 0, unroll=unroll)

    # Right -> left: o[pos] = relu(conv(o[pos+1])) + o[pos], pos = W-2 .. 0
    def _bwd(j, _):
        pos = w_cols - 2 - j
        for k in range(num_chains):
            rows = pl.ds(k * half, half)
            o_ref[pos, rows] = _step(o_ref[pos + 1, rows], o_ref[pos, rows])
        return 0

    lax.fori_loop(0, w_cols - 1, _bwd, 0, unroll=unroll)


def conv_lr_forward(fea, conv_weight, conv_bias, *,
                    matmul_dtype=jnp.bfloat16,
                    nh_tile_target=512,
                    vmem_limit_bytes=None):
    """Pallas implementation of convLR.forward.

    fea:         (N, C, H, W)   NCHW, matches the PyTorch module
    conv_weight: (C, C, 1, KW)  Conv2d weight (kernel height must be 1, KW odd)
    conv_bias:   (C,)           Conv2d bias
    matmul_dtype: MXU operand dtype. bf16 (default) runs native on the MXU with
                  f32 accumulation and an f32 scan state; pass jnp.float32 for
                  bit-level fidelity.
    """
    n, c, h, w = fea.shape
    kh, kw = conv_weight.shape[2], conv_weight.shape[3]
    assert kh == 1, "convLR Pallas kernel implements the default kernel height 1"
    assert kw % 2 == 1, "center-tap collapse requires odd kw with symmetric zero padding"
    # TODO(synk): kernel heights > 1 would need a true 1-D conv over H per column.

    compute_dtype = jnp.dtype(matmul_dtype)
    use_bf16 = compute_dtype == jnp.dtype(jnp.bfloat16)
    in_dtype = jnp.dtype(jnp.bfloat16) if use_bf16 else jnp.dtype(jnp.float32)

    # Only the center width tap of the (1, kw) kernel ever sees non-padded data.
    w_eff = conv_weight[:, :, 0, (kw - 1) // 2]            # (C_out, C_in)
    w_t = jnp.asarray(w_eff.T, jnp.float32)                # (C_in, C_out)
    b2 = jnp.asarray(conv_bias, jnp.float32).reshape(1, c)

    # NCHW -> (W, N*H, C): channels on the lane axis, width is the scan axis.
    # Cast BEFORE the transpose so the (only) HBM transpose moves narrow bytes.
    # TODO(synk): if adjacent layers can run channels-last, these two HBM
    # transposes (here and at the end) can be deleted entirely.
    nh = n * h
    x_wnc = jnp.transpose(fea.astype(in_dtype), (3, 0, 2, 1)).reshape(w, nh, c)

    # Pad the channel (lane) axis to a multiple of 128: zero-padded channels
    # stay exactly zero through the recurrence, so results are unaffected.
    cp = _round_up(c, 128)

    # ---- dtype- and generation-aware VMEM budget -> NH tile ----
    vmem_limit = int(vmem_limit_bytes) if vmem_limit_bytes else _pick_vmem_limit()
    in_bytes = in_dtype.itemsize
    w_bytes = compute_dtype.itemsize
    # Resident: in + out slabs, each double-buffered, plus weights/bias (double
    # buffered) and ~4 MiB headroom for the bias broadcast / per-step temporaries.
    fixed = 2 * cp * cp * w_bytes + 2 * cp * 4 + (4 << 20)
    per_row = 2 * w * cp * (in_bytes + 4)
    max_rows = max(16, (vmem_limit - fixed) // per_row)
    # TODO(synk): for very large W*Cp (max_rows < ~64) the input slab should be
    # streamed column-by-column with a manual double-buffered DMA instead of
    # being held resident; not needed at these shapes.

    nh_tile = min(int(nh_tile_target), int(max_rows))
    nh_tile = max(16, (nh_tile // 16) * 16)                 # multiple of 16 (bf16 sublanes)
    nh_tile = min(nh_tile, _round_up(nh, 16))
    # Guarantee >= 2 grid tiles (v7x megacore) when each half still fills the MXU.
    half_nh = _round_up(-(-nh // 2), 16)
    if half_nh >= 256:
        nh_tile = min(nh_tile, half_nh)

    nhp = _round_up(max(nh, nh_tile), nh_tile)

    if (nhp, cp) != (nh, c):
        x_wnc = jnp.pad(x_wnc, ((0, 0), (0, nhp - nh), (0, cp - c)))
    if cp != c:
        w_t = jnp.pad(w_t, ((0, cp - c), (0, cp - c)))
        b2 = jnp.pad(b2, ((0, 0), (0, cp - c)))
    w_t = w_t.astype(compute_dtype)

    num_tiles = nhp // nh_tile
    num_chains = 2 if (nh_tile % 16 == 0 and nh_tile >= 16) else 1
    unroll = int(min(max(w - 1, 1), 8))

    # Donate the padded HBM slab as the output buffer when dtypes match (f32 path).
    io_alias = {2: 0} if in_dtype == jnp.dtype(jnp.float32) else {}

    out = pl.pallas_call(
        functools.partial(_fused_scan_kernel, compute_dtype=compute_dtype,
                          num_chains=num_chains, unroll=unroll),
        out_shape=jax.ShapeDtypeStruct((w, nhp, cp), jnp.float32),
        grid_spec=pltpu.PrefetchScalarGridSpec(
            num_scalar_prefetch=0,
            grid=(num_tiles,),
            in_specs=[
                pl.BlockSpec((cp, cp), lambda t: (0, 0)),          # weight (resident)
                pl.BlockSpec((1, cp), lambda t: (0, 0)),           # bias   (resident)
                pl.BlockSpec((w, nh_tile, cp), lambda t: (0, t, 0)),
            ],
            out_specs=pl.BlockSpec((w, nh_tile, cp), lambda t: (0, t, 0)),
        ),
        compiler_params=pltpu.CompilerParams(
            # NH tiles are fully independent across the W recurrence:
            # megacore (v7x) shards this axis across TensorCores.
            dimension_semantics=("parallel",),
            vmem_limit_bytes=vmem_limit,
        ),
        input_output_aliases=io_alias,
    )(w_t, b2, x_wnc)

    out = out[:, :nh, :c].astype(fea.dtype).reshape(w, n, h, c)
    return jnp.transpose(out, (1, 3, 2, 0))


def _reference(fea, conv_weight, conv_bias):
    """Pure-JAX reference mirroring the PyTorch loops exactly (f32)."""
    n, c, h, w = fea.shape
    kw = conv_weight.shape[3]
    w_eff = conv_weight[:, :, 0, (kw - 1) // 2]

    def conv_relu(x):  # x: (n, c, h)
        y = jnp.einsum("oc,nch->noh", w_eff, x) + conv_bias[None, :, None]
        return jnp.maximum(y, 0.0)

    cols = [fea[:, :, :, i].astype(jnp.float32) for i in range(w)]
    stack = [cols[0]]
    for i in range(1, w):
        stack.append(conv_relu(stack[i - 1]) + cols[i])
    for i in range(1, w):
        pos = w - 1 - i
        stack[pos] = conv_relu(stack[pos + 1]) + stack[pos]
    return jnp.stack(stack, axis=3)


if __name__ == "__main__":
    forward_bf16 = jax.jit(conv_lr_forward)  # default: bf16 MXU operands
    forward_f32 = jax.jit(functools.partial(conv_lr_forward, matmul_dtype=jnp.float32))

    def _run_case(key, n, c, h, w, kh=1, kw=9):
        k_x, k_w, k_b = jax.random.split(key, 3)
        fea = jax.random.normal(k_x, (n, c, h, w), dtype=jnp.float32)
        # Deterministic Conv2d-style init (kaiming-uniform-ish bounds).
        fan_in = c * kh * kw
        bound = 1.0 / math.sqrt(fan_in)
        conv_weight = jax.random.uniform(k_w, (c, c, kh, kw), jnp.float32, -bound, bound)
        conv_bias = jax.random.uniform(k_b, (c,), jnp.float32, -bound, bound)

        ref = _reference(fea, conv_weight, conv_bias)

        # f32 path: bit-level fidelity check of the fused scan.
        out32 = jax.block_until_ready(forward_f32(fea, conv_weight, conv_bias))
        np.testing.assert_allclose(np.asarray(out32), np.asarray(ref),
                                   rtol=1e-5, atol=1e-5)

        # Default bf16 MXU path: f32 accumulation/state, bf16 operands.
        out16 = jax.block_until_ready(forward_bf16(fea, conv_weight, conv_bias))
        np.testing.assert_allclose(np.asarray(out16), np.asarray(ref),
                                   rtol=3e-2, atol=3e-2)

    key = jax.random.PRNGKey(0)
    k1, k2 = jax.random.split(key)
    _run_case(k1, 2, 128, 8, 8)   # lane-aligned C, NH already a multiple of 16
    _run_case(k2, 1, 96, 5, 6)    # exercises the C- and NH-padding paths

    print("KERNEL_OK")
</pallas_src>

<mosaic_0001>
module attributes {stable_mosaic.version = 11 : i64} {
  func.func @_fused_scan_kernel(%arg0: i32, %arg1: memref<128x128xf32, #tpu.memory_space<vmem>>, %arg2: memref<1x128xf32, #tpu.memory_space<vmem>>, %arg3: memref<8x16x128xf32, #tpu.memory_space<vmem>>, %arg4: memref<8x16x128xf32, #tpu.memory_space<vmem>>) attributes {dimension_semantics = [#tpu.dimension_semantics<parallel>], iteration_bounds = array<i64: 1>, scalar_prefetch = 0 : i64, scratch_operands = 0 : i64, tpu.core_type = #tpu.core_type<tc>, window_params = [{pipeline_mode = #tpu.pipeline_mode<synchronous>, transform_indices = @transform_0, window_bounds = array<i64: 128, 128>}, {pipeline_mode = #tpu.pipeline_mode<synchronous>, transform_indices = @transform_1, window_bounds = array<i64: 1, 128>}, {transform_indices = @transform_2, window_bounds = array<i64: 8, 16, 128>}, {transform_indices = @transform_3, window_bounds = array<i64: 8, 16, 128>}]} {
    %c0 = arith.constant 0 : index
    %c0_0 = arith.constant 0 : index
    %0 = vector.load %arg1[%c0, %c0_0] : memref<128x128xf32, #tpu.memory_space<vmem>>, vector<128x128xf32>
    %c0_1 = arith.constant 0 : index
    %c0_2 = arith.constant 0 : index
    %1 = vector.load %arg2[%c0_1, %c0_2] : memref<1x128xf32, #tpu.memory_space<vmem>>, vector<1x128xf32>
    %2 = vector.shape_cast %1 : vector<1x128xf32> to vector<1x128xf32>
    %3 = vector.broadcast %2 : vector<1x128xf32> to vector<8x128xf32>
    %c0_3 = arith.constant 0 : index
    %c0_4 = arith.constant 0 : index
    %c0_5 = arith.constant 0 : index
    %4 = vector.load %arg3[%c0_3, %c0_4, %c0_5] : memref<8x16x128xf32, #tpu.memory_space<vmem>>, vector<1x16x128xf32>
    %5 = vector.shape_cast %4 : vector<1x16x128xf32> to vector<16x128xf32>
    %c0_6 = arith.constant 0 : index
    %c0_7 = arith.constant 0 : index
    %c0_8 = arith.constant 0 : index
    %6 = vector.load %arg4[%c0_6, %c0_7, %c0_8] : memref<8x16x128xf32, #tpu.memory_space<vmem>>, vector<1x16x128xf32>
    %7 = vector.shape_cast %6 : vector<1x16x128xf32> to vector<16x128xf32>
    %8 = vector.shape_cast %5 : vector<16x128xf32> to vector<1x16x128xf32>
    tpu.vector_store %arg4[%c0_6, %c0_7, %c0_8], %8 {strides = array<i32>} : memref<8x16x128xf32, #tpu.memory_space<vmem>>, vector<1x16x128xf32>,
    %c1_i32 = arith.constant 1 : i32
    %c1_i32_9 = arith.constant 1 : i32
    %9 = arith.subi %c1_i32, %c1_i32_9 : i32
    %10 = arith.index_cast %9 : i32 to index
    %c0_10 = arith.constant 0 : index
    %c0_11 = arith.constant 0 : index
    %11 = vector.load %arg4[%10, %c0_10, %c0_11] : memref<8x16x128xf32, #tpu.memory_space<vmem>>, vector<1x8x128xf32>
    %12 = vector.shape_cast %11 : vector<1x8x128xf32> to vector<8x128xf32>
    %13 = arith.index_cast %c1_i32 : i32 to index
    %c0_12 = arith.constant 0 : index
    %c0_13 = arith.constant 0 : index
    %14 = vector.load %arg3[%13, %c0_12, %c0_13] : memref<8x16x128xf32, #tpu.memory_space<vmem>>, vector<1x8x128xf32>
    %15 = vector.shape_cast %14 : vector<1x8x128xf32> to vector<8x128xf32>
    %cst = arith.constant dense<0.000000e+00> : vector<8x128xf32>
    %16 = tpu.matmul %12, %0, %cst {dimension_numbers = #tpu.dot_dimension_numbers<[1], [0], [0], [1], [0, 0, 1, 1], [], []>} : vector<8x128xf32>, vector<128x128xf32>, vector<8x128xf32> -> vector<8x128xf32>
    %17 = arith.addf %16, %3 : vector<8x128xf32>
    %cst_14 = arith.constant 0.000000e+00 : f32
    %18 = vector.broadcast %cst_14 : f32 to vector<8x128xf32>
    %19 = arith.maximumf %17, %18 : vector<8x128xf32>
    %20 = arith.addf %19, %15 : vector<8x128xf32>
    %21 = arith.index_cast %c1_i32 : i32 to index
    %c0_15 = arith.constant 0 : index
    %c0_16 = arith.constant 0 : index
    %22 = vector.load %arg4[%21, %c0_15, %c0_16] : memref<8x16x128xf32, #tpu.memory_space<vmem>>, vector<1x8x128xf32>
    %23 = vector.shape_cast %22 : vector<1x8x128xf32> to vector<8x128xf32>
    %24 = vector.shape_cast %20 : vector<8x128xf32> to vector<1x8x128xf32>
    tpu.vector_store %arg4[%21, %c0_15, %c0_16], %24 {strides = array<i32>} : memref<8x16x128xf32, #tpu.memory_space<vmem>>, vector<1x8x128xf32>,
    %c1_i32_17 = arith.constant 1 : i32
    %25 = arith.subi %c1_i32, %c1_i32_17 : i32
    %26 = arith.index_cast %25 : i32 to index
    %c8 = arith.constant 8 : index
    %c0_18 = arith.constant 0 : index
    %27 = vector.load %arg4[%26, %c8, %c0_18] : memref<8x16x128xf32, #tpu.memory_space<vmem>>, vector<1x8x128xf32>
    %28 = vector.shape_cast %27 : vector<1x8x128xf32> to vector<8x128xf32>
    %29 = arith.index_cast %c1_i32 : i32 to index
    %c8_19 = arith.constant 8 : index
    %c0_20 = arith.constant 0 : index
    %30 = vector.load %arg3[%29, %c8_19, %c0_20] : memref<8x16x128xf32, #tpu.memory_space<vmem>>, vector<1x8x128xf32>
    %31 = vector.shape_cast %30 : vector<1x8x128xf32> to vector<8x128xf32>
    %cst_21 = arith.constant dense<0.000000e+00> : vector<8x128xf32>
    %32 = tpu.matmul %28, %0, %cst_21 {dimension_numbers = #tpu.dot_dimension_numbers<[1], [0], [0], [1], [0, 0, 1, 1], [], []>} : vector<8x128xf32>, vector<128x128xf32>, vector<8x128xf32> -> vector<8x128xf32>
    %33 = arith.addf %32, %3 : vector<8x128xf32>
    %cst_22 = arith.constant 0.000000e+00 : f32
    %34 = vector.broadcast %cst_22 : f32 to vector<8x128xf32>
    %35 = arith.maximumf %33, %34 : vector<8x128xf32>
    %36 = arith.addf %35, %31 : vector<8x128xf32>
    %37 = arith.index_cast %c1_i32 : i32 to index
    %c8_23 = arith.constant 8 : index
    %c0_24 = arith.constant 0 : index
    %38 = vector.load %arg4[%37, %c8_23, %c0_24] : memref<8x16x128xf32, #tpu.memory_space<vmem>>, vector<1x8x128xf32>
    %39 = vector.shape_cast %38 : vector<1x8x128xf32> to vector<8x128xf32>
    %40 = vector.shape_cast %36 : vector<8x128xf32> to vector<1x8x128xf32>
    tpu.vector_store %arg4[%37, %c8_23, %c0_24], %40 {strides = array<i32>} : memref<8x16x128xf32, #tpu.memory_space<vmem>>, vector<1x8x128xf32>,
    %c2_i32 = arith.constant 2 : i32
    %c1_i32_25 = arith.constant 1 : i32
    %41 = arith.subi %c2_i32, %c1_i32_25 : i32
    %42 = arith.index_cast %41 : i32 to index
    %c0_26 = arith.constant 0 : index
    %c0_27 = arith.constant 0 : index
    %43 = vector.load %arg4[%42, %c0_26, %c0_27] : memref<8x16x128xf32, #tpu.memory_space<vmem>>, vector<1x8x128xf32>
    %44 = vector.shape_cast %43 : vector<1x8x128xf32> to vector<8x128xf32>
    %45 = arith.index_cast %c2_i32 : i32 to index
    %c0_28 = arith.constant 0 : index
    %c0_29 = arith.constant 0 : index
    %46 = vector.load %arg3[%45, %c0_28, %c0_29] : memref<8x16x128xf32, #tpu.memory_space<vmem>>, vector<1x8x128xf32>
    %47 = vector.shape_cast %46 : vector<1x8x128xf32> to vector<8x128xf32>
    %cst_30 = arith.constant dense<0.000000e+00> : vector<8x128xf32>
    %48 = tpu.matmul %44, %0, %cst_30 {dimension_numbers = #tpu.dot_dimension_numbers<[1], [0], [0], [1], [0, 0, 1, 1], [], []>} : vector<8x128xf32>, vector<128x128xf32>, vector<8x128xf32> -> vector<8x128xf32>
    %49 = arith.addf %48, %3 : vector<8x128xf32>
    %cst_31 = arith.constant 0.000000e+00 : f32
    %50 = vector.broadcast %cst_31 : f32 to vector<8x128xf32>
    %51 = arith.maximumf %49, %50 : vector<8x128xf32>
    %52 = arith.addf %51, %47 : vector<8x128xf32>
    %53 = arith.index_cast %c2_i32 : i32 to index
    %c0_32 = arith.constant 0 : index
    %c0_33 = arith.constant 0 : index
    %54 = vector.load %arg4[%53, %c0_32, %c0_33] : memref<8x16x128xf32, #tpu.memory_space<vmem>>, vector<1x8x128xf32>
    %55 = vector.shape_cast %54 : vector<1x8x128xf32> to vector<8x128xf32>
    %56 = vector.shape_cast %52 : vector<8x128xf32> to vector<1x8x128xf32>
    tpu.vector_store %arg4[%53, %c0_32, %c0_33], %56 {strides = array<i32>} : memref<8x16x128xf32, #tpu.memory_space<vmem>>, vector<1x8x128xf32>,
    %c1_i32_34 = arith.constant 1 : i32
    %57 = arith.subi %c2_i32, %c1_i32_34 : i32
    %58 = arith.index_cast %57 : i32 to index
    %c8_35 = arith.constant 8 : index
    %c0_36 = arith.constant 0 : index
    %59 = vector.load %arg4[%58, %c8_35, %c0_36] : memref<8x16x128xf32, #tpu.memory_space<vmem>>, vector<1x8x128xf32>
    %60 = vector.shape_cast %59 : vector<1x8x128xf32> to vector<8x128xf32>
    %61 = arith.index_cast %c2_i32 : i32 to index
    %c8_37 = arith.constant 8 : index
    %c0_38 = arith.constant 0 : index
    %62 = vector.load %arg3[%61, %c8_37, %c0_38] : memref<8x16x128xf32, #tpu.memory_space<vmem>>, vector<1x8x128xf32>
    %63 = vector.shape_cast %62 : vector<1x8x128xf32> to vector<8x128xf32>
    %cst_39 = arith.constant dense<0.000000e+00> : vector<8x128xf32>
    %64 = tpu.matmul %60, %0, %cst_39 {dimension_numbers = #tpu.dot_dimension_numbers<[1], [0], [0], [1], [0, 0, 1, 1], [], []>} : vector<8x128xf32>, vector<128x128xf32>, vector<8x128xf32> -> vector<8x128xf32>
    %65 = arith.addf %64, %3 : vector<8x128xf32>
    %cst_40 = arith.constant 0.000000e+00 : f32
    %66 = vector.broadcast %cst_40 : f32 to vector<8x128xf32>
    %67 = arith.maximumf %65, %66 : vector<8x128xf32>
    %68 = arith.addf %67, %63 : vector<8x128xf32>
    %69 = arith.index_cast %c2_i32 : i32 to index
    %c8_41 = arith.constant 8 : index
    %c0_42 = arith.constant 0 : index
    %70 = vector.load %arg4[%69, %c8_41, %c0_42] : memref<8x16x128xf32, #tpu.memory_space<vmem>>, vector<1x8x128xf32>
    %71 = vector.shape_cast %70 : vector<1x8x128xf32> to vector<8x128xf32>
    %72 = vector.shape_cast %68 : vector<8x128xf32> to vector<1x8x128xf32>
    tpu.vector_store %arg4[%69, %c8_41, %c0_42], %72 {strides = array<i32>} : memref<8x16x128xf32, #tpu.memory_space<vmem>>, vector<1x8x128xf32>,
    %c3_i32 = arith.constant 3 : i32
    %c1_i32_43 = arith.constant 1 : i32
    %73 = arith.subi %c3_i32, %c1_i32_43 : i32
    %74 = arith.index_cast %73 : i32 to index
    %c0_44 = arith.constant 0 : index
    %c0_45 = arith.constant 0 : index
    %75 = vector.load %arg4[%74, %c0_44, %c0_45] : memref<8x16x128xf32, #tpu.memory_space<vmem>>, vector<1x8x128xf32>
    %76 = vector.shape_cast %75 : vector<1x8x128xf32> to vector<8x128xf32>
    %77 = arith.index_cast %c3_i32 : i32 to index
    %c0_46 = arith.constant 0 : index
    %c0_47 = arith.constant 0 : index
    %78 = vector.load %arg3[%77, %c0_46, %c0_47] : memref<8x16x128xf32, #tpu.memory_space<vmem>>, vector<1x8x128xf32>
    %79 = vector.shape_cast %78 : vector<1x8x128xf32> to vector<8x128xf32>
    %cst_48 = arith.constant dense<0.000000e+00> : vector<8x128xf32>
    %80 = tpu.matmul %76, %0, %cst_48 {dimension_numbers = #tpu.dot_dimension_numbers<[1], [0], [0], [1], [0, 0, 1, 1], [], []>} : vector<8x128xf32>, vector<128x128xf32>, vector<8x128xf32> -> vector<8x128xf32>
    %81 = arith.addf %80, %3 : vector<8x128xf32>
    %cst_49 = arith.constant 0.000000e+00 : f32
    %82 = vector.broadcast %cst_49 : f32 to vector<8x128xf32>
    %83 = arith.maximumf %81, %82 : vector<8x128xf32>
    %84 = arith.addf %83, %79 : vector<8x128xf32>
    %85 = arith.index_cast %c3_i32 : i32 to index
    %c0_50 = arith.constant 0 : index
    %c0_51 = arith.constant 0 : index
    %86 = vector.load %arg4[%85, %c0_50, %c0_51] : memref<8x16x128xf32, #tpu.memory_space<vmem>>, vector<1x8x128xf32>
    %87 = vector.shape_cast %86 : vector<1x8x128xf32> to vector<8x128xf32>
    %88 = vector.shape_cast %84 : vector<8x128xf32> to vector<1x8x128xf32>
    tpu.vector_store %arg4[%85, %c0_50, %c0_51], %88 {strides = array<i32>} : memref<8x16x128xf32, #tpu.memory_space<vmem>>, vector<1x8x128xf32>,
    %c1_i32_52 = arith.constant 1 : i32
    %89 = arith.subi %c3_i32, %c1_i32_52 : i32
    %90 = arith.index_cast %89 : i32 to index
    %c8_53 = arith.constant 8 : index
    %c0_54 = arith.constant 0 : index
    %91 = vector.load %arg4[%90, %c8_53, %c0_54] : memref<8x16x128xf32, #tpu.memory_space<vmem>>, vector<1x8x128xf32>
    %92 = vector.shape_cast %91 : vector<1x8x128xf32> to vector<8x128xf32>
    %93 = arith.index_cast %c3_i32 : i32 to index
    %c8_55 = arith.constant 8 : index
    %c0_56 = arith.constant 0 : index
    %94 = vector.load %arg3[%93, %c8_55, %c0_56] : memref<8x16x128xf32, #tpu.memory_space<vmem>>, vector<1x8x128xf32>
    %95 = vector.shape_cast %94 : vector<1x8x128xf32> to vector<8x128xf32>
    %cst_57 = arith.constant dense<0.000000e+00> : vector<8x128xf32>
    %96 = tpu.matmul %92, %0, %cst_57 {dimension_numbers = #tpu.dot_dimension_numbers<[1], [0], [0], [1], [0, 0, 1, 1], [], []>} : vector<8x128xf32>, vector<128x128xf32>, vector<8x128xf32> -> vector<8x128xf32>
    %97 = arith.addf %96, %3 : vector<8x128xf32>
    %cst_58 = arith.constant 0.000000e+00 : f32
    %98 = vector.broadcast %cst_58 : f32 to vector<8x128xf32>
    %99 = arith.maximumf %97, %98 : vector<8x128xf32>
    %100 = arith.addf %99, %95 : vector<8x128xf32>
    %101 = arith.index_cast %c3_i32 : i32 to index
    %c8_59 = arith.constant 8 : index
    %c0_60 = arith.constant 0 : index
    %102 = vector.load %arg4[%101, %c8_59, %c0_60] : memref<8x16x128xf32, #tpu.memory_space<vmem>>, vector<1x8x128xf32>
    %103 = vector.shape_cast %102 : vector<1x8x128xf32> to vector<8x128xf32>
    %104 = vector.shape_cast %100 : vector<8x128xf32> to vector<1x8x128xf32>
    tpu.vector_store %arg4[%101, %c8_59, %c0_60], %104 {strides = array<i32>} : memref<8x16x128xf32, #tpu.memory_space<vmem>>, vector<1x8x128xf32>,
    %c4_i32 = arith.constant 4 : i32
    %c1_i32_61 = arith.constant 1 : i32
    %105 = arith.subi %c4_i32, %c1_i32_61 : i32
    %106 = arith.index_cast %105 : i32 to index
    %c0_62 = arith.constant 0 : index
    %c0_63 = arith.constant 0 : index
    %107 = vector.load %arg4[%106, %c0_62, %c0_63] : memref<8x16x128xf32, #tpu.memory_space<vmem>>, vector<1x8x128xf32>
    %108 = vector.shape_cast %107 : vector<1x8x128xf32> to vector<8x128xf32>
    %109 = arith.index_cast %c4_i32 : i32 to index
    %c0_64 = arith.constant 0 : index
    %c0_65 = arith.constant 0 : index
    %110 = vector.load %arg3[%109, %c0_64, %c0_65] : memref<8x16x128xf32, #tpu.memory_space<vmem>>, vector<1x8x128xf32>
    %111 = vector.shape_cast %110 : vector<1x8x128xf32> to vector<8x128xf32>
    %cst_66 = arith.constant dense<0.000000e+00> : vector<8x128xf32>
    %112 = tpu.matmul %108, %0, %cst_66 {dimension_numbers = #tpu.dot_dimension_numbers<[1], [0], [0], [1], [0, 0, 1, 1], [], []>} : vector<8x128xf32>, vector<128x128xf32>, vector<8x128xf32> -> vector<8x128xf32>
    %113 = arith.addf %112, %3 : vector<8x128xf32>
    %cst_67 = arith.constant 0.000000e+00 : f32
    %114 = vector.broadcast %cst_67 : f32 to vector<8x128xf32>
    %115 = arith.maximumf %113, %114 : vector<8x128xf32>
    %116 = arith.addf %115, %111 : vector<8x128xf32>
    %117 = arith.index_cast %c4_i32 : i32 to index
    %c0_68 = arith.constant 0 : index
    %c0_69 = arith.constant 0 : index
    %118 = vector.load %arg4[%117, %c0_68, %c0_69] : memref<8x16x128xf32, #tpu.memory_space<vmem>>, vector<1x8x128xf32>
    %119 = vector.shape_cast %118 : vector<1x8x128xf32> to vector<8x128xf32>
    %120 = vector.shape_cast %116 : vector<8x128xf32> to vector<1x8x128xf32>
    tpu.vector_store %arg4[%117, %c0_68, %c0_69], %120 {strides = array<i32>} : memref<8x16x128xf32, #tpu.memory_space<vmem>>, vector<1x8x128xf32>,
    %c1_i32_70 = arith.constant 1 : i32
    %121 = arith.subi %c4_i32, %c1_i32_70 : i32
    %122 = arith.index_cast %121 : i32 to index
    %c8_71 = arith.constant 8 : index
    %c0_72 = arith.constant 0 : index
    %123 = vector.load %arg4[%122, %c8_71, %c0_72] : memref<8x16x128xf32, #tpu.memory_space<vmem>>, vector<1x8x128xf32>
    %124 = vector.shape_cast %123 : vector<1x8x128xf32> to vector<8x128xf32>
    %125 = arith.index_cast %c4_i32 : i32 to index
    %c8_73 = arith.constant 8 : index
    %c0_74 = arith.constant 0 : index
    %126 = vector.load %arg3[%125, %c8_73, %c0_74] : memref<8x16x128xf32, #tpu.memory_space<vmem>>, vector<1x8x128xf32>
    %127 = vector.shape_cast %126 : vector<1x8x128xf32> to vector<8x128xf32>
    %cst_75 = arith.constant dense<0.000000e+00> : vector<8x128xf32>
    %128 = tpu.matmul %124, %0, %cst_75 {dimension_numbers = #tpu.dot_dimension_numbers<[1], [0], [0], [1], [0, 0, 1, 1], [], []>} : vector<8x128xf32>, vector<128x128xf32>, vector<8x128xf32> -> vector<8x128xf32>
    %129 = arith.addf %128, %3 : vector<8x128xf32>
    %cst_76 = arith.constant 0.000000e+00 : f32
    %130 = vector.broadcast %cst_76 : f32 to vector<8x128xf32>
    %131 = arith.maximumf %129, %130 : vector<8x128xf32>
    %132 = arith.addf %131, %127 : vector<8x128xf32>
    %133 = arith.index_cast %c4_i32 : i32 to index
    %c8_77 = arith.constant 8 : index
    %c0_78 = arith.constant 0 : index
    %134 = vector.load %arg4[%133, %c8_77, %c0_78] : memref<8x16x128xf32, #tpu.memory_space<vmem>>, vector<1x8x128xf32>
    %135 = vector.shape_cast %134 : vector<1x8x128xf32> to vector<8x128xf32>
    %136 = vector.shape_cast %132 : vector<8x128xf32> to vector<1x8x128xf32>
    tpu.vector_store %arg4[%133, %c8_77, %c0_78], %136 {strides = array<i32>} : memref<8x16x128xf32, #tpu.memory_space<vmem>>, vector<1x8x128xf32>,
    %c5_i32 = arith.constant 5 : i32
    %c1_i32_79 = arith.constant 1 : i32
    %137 = arith.subi %c5_i32, %c1_i32_79 : i32
    %138 = arith.index_cast %137 : i32 to index
    %c0_80 = arith.constant 0 : index
    %c0_81 = arith.constant 0 : index
    %139 = vector.load %arg4[%138, %c0_80, %c0_81] : memref<8x16x128xf32, #tpu.memory_space<vmem>>, vector<1x8x128xf32>
    %140 = vector.shape_cast %139 : vector<1x8x128xf32> to vector<8x128xf32>
    %141 = arith.index_cast %c5_i32 : i32 to index
    %c0_82 = arith.constant 0 : index
    %c0_83 = arith.constant 0 : index
    %142 = vector.load %arg3[%141, %c0_82, %c0_83] : memref<8x16x128xf32, #tpu.memory_space<vmem>>, vector<1x8x128xf32>
    %143 = vector.shape_cast %142 : vector<1x8x128xf32> to vector<8x128xf32>
    %cst_84 = arith.constant dense<0.000000e+00> : vector<8x128xf32>
    %144 = tpu.matmul %140, %0, %cst_84 {dimension_numbers = #tpu.dot_dimension_numbers<[1], [0], [0], [1], [0, 0, 1, 1], [], []>} : vector<8x128xf32>, vector<128x128xf32>, vector<8x128xf32> -> vector<8x128xf32>
    %145 = arith.addf %144, %3 : vector<8x128xf32>
    %cst_85 = arith.constant 0.000000e+00 : f32
    %146 = vector.broadcast %cst_85 : f32 to vector<8x128xf32>
    %147 = arith.maximumf %145, %146 : vector<8x128xf32>
    %148 = arith.addf %147, %143 : vector<8x128xf32>
    %149 = arith.index_cast %c5_i32 : i32 to index
    %c0_86 = arith.constant 0 : index
    %c0_87 = arith.constant 0 : index
    %150 = vector.load %arg4[%149, %c0_86, %c0_87] : memref<8x16x128xf32, #tpu.memory_space<vmem>>, vector<1x8x128xf32>
    %151 = vector.shape_cast %150 : vector<1x8x128xf32> to vector<8x128xf32>
    %152 = vector.shape_cast %148 : vector<8x128xf32> to vector<1x8x128xf32>
    tpu.vector_store %arg4[%149, %c0_86, %c0_87], %152 {strides = array<i32>} : memref<8x16x128xf32, #tpu.memory_space<vmem>>, vector<1x8x128xf32>,
    %c1_i32_88 = arith.constant 1 : i32
    %153 = arith.subi %c5_i32, %c1_i32_88 : i32
    %154 = arith.index_cast %153 : i32 to index
    %c8_89 = arith.constant 8 : index
    %c0_90 = arith.constant 0 : index
    %155 = vector.load %arg4[%154, %c8_89, %c0_90] : memref<8x16x128xf32, #tpu.memory_space<vmem>>, vector<1x8x128xf32>
    %156 = vector.shape_cast %155 : vector<1x8x128xf32> to vector<8x128xf32>
    %157 = arith.index_cast %c5_i32 : i32 to index
    %c8_91 = arith.constant 8 : index
    %c0_92 = arith.constant 0 : index
    %158 = vector.load %arg3[%157, %c8_91, %c0_92] : memref<8x16x128xf32, #tpu.memory_space<vmem>>, vector<1x8x128xf32>
    %159 = vector.shape_cast %158 : vector<1x8x128xf32> to vector<8x128xf32>
    %cst_93 = arith.constant dense<0.000000e+00> : vector<8x128xf32>
    %160 = tpu.matmul %156, %0, %cst_93 {dimension_numbers = #tpu.dot_dimension_numbers<[1], [0], [0], [1], [0, 0, 1, 1], [], []>} : vector<8x128xf32>, vector<128x128xf32>, vector<8x128xf32> -> vector<8x128xf32>
    %161 = arith.addf %160, %3 : vector<8x128xf32>
    %cst_94 = arith.constant 0.000000e+00 : f32
    %162 = vector.broadcast %cst_94 : f32 to vector<8x128xf32>
    %163 = arith.maximumf %161, %162 : vector<8x128xf32>
    %164 = arith.addf %163, %159 : vector<8x128xf32>
    %165 = arith.index_cast %c5_i32 : i32 to index
    %c8_95 = arith.constant 8 : index
    %c0_96 = arith.constant 0 : index
    %166 = vector.load %arg4[%165, %c8_95, %c0_96] : memref<8x16x128xf32, #tpu.memory_space<vmem>>, vector<1x8x128xf32>
    %167 = vector.shape_cast %166 : vector<1x8x128xf32> to vector<8x128xf32>
    %168 = vector.shape_cast %164 : vector<8x128xf32> to vector<1x8x128xf32>
    tpu.vector_store %arg4[%165, %c8_95, %c0_96], %168 {strides = array<i32>} : memref<8x16x128xf32, #tpu.memory_space<vmem>>, vector<1x8x128xf32>,
    %c6_i32 = arith.constant 6 : i32
    %c1_i32_97 = arith.constant 1 : i32
    %169 = arith.subi %c6_i32, %c1_i32_97 : i32
    %170 = arith.index_cast %169 : i32 to index
    %c0_98 = arith.constant 0 : index
    %c0_99 = arith.constant 0 : index
    %171 = vector.load %arg4[%170, %c0_98, %c0_99] : memref<8x16x128xf32, #tpu.memory_space<vmem>>, vector<1x8x128xf32>
    %172 = vector.shape_cast %171 : vector<1x8x128xf32> to vector<8x128xf32>
    %173 = arith.index_cast %c6_i32 : i32 to index
    %c0_100 = arith.constant 0 : index
    %c0_101 = arith.constant 0 : index
    %174 = vector.load %arg3[%173, %c0_100, %c0_101] : memref<8x16x128xf32, #tpu.memory_space<vmem>>, vector<1x8x128xf32>
    %175 = vector.shape_cast %174 : vector<1x8x128xf32> to vector<8x128xf32>
    %cst_102 = arith.constant dense<0.000000e+00> : vector<8x128xf32>
    %176 = tpu.matmul %172, %0, %cst_102 {dimension_numbers = #tpu.dot_dimension_numbers<[1], [0], [0], [1], [0, 0, 1, 1], [], []>} : vector<8x128xf32>, vector<128x128xf32>, vector<8x128xf32> -> vector<8x128xf32>
    %177 = arith.addf %176, %3 : vector<8x128xf32>
    %cst_103 = arith.constant 0.000000e+00 : f32
    %178 = vector.broadcast %cst_103 : f32 to vector<8x128xf32>
    %179 = arith.maximumf %177, %178 : vector<8x128xf32>
    %180 = arith.addf %179, %175 : vector<8x128xf32>
    %181 = arith.index_cast %c6_i32 : i32 to index
    %c0_104 = arith.constant 0 : index
    %c0_105 = arith.constant 0 : index
    %182 = vector.load %arg4[%181, %c0_104, %c0_105] : memref<8x16x128xf32, #tpu.memory_space<vmem>>, vector<1x8x128xf32>
    %183 = vector.shape_cast %182 : vector<1x8x128xf32> to vector<8x128xf32>
    %184 = vector.shape_cast %180 : vector<8x128xf32> to vector<1x8x128xf32>
    tpu.vector_store %arg4[%181, %c0_104, %c0_105], %184 {strides = array<i32>} : memref<8x16x128xf32, #tpu.memory_space<vmem>>, vector<1x8x128xf32>,
    %c1_i32_106 = arith.constant 1 : i32
    %185 = arith.subi %c6_i32, %c1_i32_106 : i32
    %186 = arith.index_cast %185 : i32 to index
    %c8_107 = arith.constant 8 : index
    %c0_108 = arith.constant 0 : index
    %187 = vector.load %arg4[%186, %c8_107, %c0_108] : memref<8x16x128xf32, #tpu.memory_space<vmem>>, vector<1x8x128xf32>
    %188 = vector.shape_cast %187 : vector<1x8x128xf32> to vector<8x128xf32>
    %189 = arith.index_cast %c6_i32 : i32 to index
    %c8_109 = arith.constant 8 : index
    %c0_110 = arith.constant 0 : index
    %190 = vector.load %arg3[%189, %c8_109, %c0_110] : memref<8x16x128xf32, #tpu.memory_space<vmem>>, vector<1x8x128xf32>
    %191 = vector.shape_cast %190 : vector<1x8x128xf32> to vector<8x128xf32>
    %cst_111 = arith.constant dense<0.000000e+00> : vector<8x128xf32>
    %192 = tpu.matmul %188, %0, %cst_111 {dimension_numbers = #tpu.dot_dimension_numbers<[1], [0], [0], [1], [0, 0, 1, 1], [], []>} : vector<8x128xf32>, vector<128x128xf32>, vector<8x128xf32> -> vector<8x128xf32>
    %193 = arith.addf %192, %3 : vector<8x128xf32>
    %cst_112 = arith.constant 0.000000e+00 : f32
    %194 = vector.broadcast %cst_112 : f32 to vector<8x128xf32>
    %195 = arith.maximumf %193, %194 : vector<8x128xf32>
    %196 = arith.addf %195, %191 : vector<8x128xf32>
    %197 = arith.index_cast %c6_i32 : i32 to index
    %c8_113 = arith.constant 8 : index
    %c0_114 = arith.constant 0 : index
    %198 = vector.load %arg4[%197, %c8_113, %c0_114] : memref<8x16x128xf32, #tpu.memory_space<vmem>>, vector<1x8x128xf32>
    %199 = vector.shape_cast %198 : vector<1x8x128xf32> to vector<8x128xf32>
    %200 = vector.shape_cast %196 : vector<8x128xf32> to vector<1x8x128xf32>
    tpu.vector_store %arg4[%197, %c8_113, %c0_114], %200 {strides = array<i32>} : memref<8x16x128xf32, #tpu.memory_space<vmem>>, vector<1x8x128xf32>,
    %c7_i32 = arith.constant 7 : i32
    %c1_i32_115 = arith.constant 1 : i32
    %201 = arith.subi %c7_i32, %c1_i32_115 : i32
    %202 = arith.index_cast %201 : i32 to index
    %c0_116 = arith.constant 0 : index
    %c0_117 = arith.constant 0 : index
    %203 = vector.load %arg4[%202, %c0_116, %c0_117] : memref<8x16x128xf32, #tpu.memory_space<vmem>>, vector<1x8x128xf32>
    %204 = vector.shape_cast %203 : vector<1x8x128xf32> to vector<8x128xf32>
    %205 = arith.index_cast %c7_i32 : i32 to index
    %c0_118 = arith.constant 0 : index
    %c0_119 = arith.constant 0 : index
    %206 = vector.load %arg3[%205, %c0_118, %c0_119] : memref<8x16x128xf32, #tpu.memory_space<vmem>>, vector<1x8x128xf32>
    %207 = vector.shape_cast %206 : vector<1x8x128xf32> to vector<8x128xf32>
    %cst_120 = arith.constant dense<0.000000e+00> : vector<8x128xf32>
    %208 = tpu.matmul %204, %0, %cst_120 {dimension_numbers = #tpu.dot_dimension_numbers<[1], [0], [0], [1], [0, 0, 1, 1], [], []>} : vector<8x128xf32>, vector<128x128xf32>, vector<8x128xf32> -> vector<8x128xf32>
    %209 = arith.addf %208, %3 : vector<8x128xf32>
    %cst_121 = arith.constant 0.000000e+00 : f32
    %210 = vector.broadcast %cst_121 : f32 to vector<8x128xf32>
    %211 = arith.maximumf %209, %210 : vector<8x128xf32>
    %212 = arith.addf %211, %207 : vector<8x128xf32>
    %213 = arith.index_cast %c7_i32 : i32 to index
    %c0_122 = arith.constant 0 : index
    %c0_123 = arith.constant 0 : index
    %214 = vector.load %arg4[%213, %c0_122, %c0_123] : memref<8x16x128xf32, #tpu.memory_space<vmem>>, vector<1x8x128xf32>
    %215 = vector.shape_cast %214 : vector<1x8x128xf32> to vector<8x128xf32>
    %216 = vector.shape_cast %212 : vector<8x128xf32> to vector<1x8x128xf32>
    tpu.vector_store %arg4[%213, %c0_122, %c0_123], %216 {strides = array<i32>} : memref<8x16x128xf32, #tpu.memory_space<vmem>>, vector<1x8x128xf32>,
    %c1_i32_124 = arith.constant 1 : i32
    %217 = arith.subi %c7_i32, %c1_i32_124 : i32
    %218 = arith.index_cast %217 : i32 to index
    %c8_125 = arith.constant 8 : index
    %c0_126 = arith.constant 0 : index
    %219 = vector.load %arg4[%218, %c8_125, %c0_126] : memref<8x16x128xf32, #tpu.memory_space<vmem>>, vector<1x8x128xf32>
    %220 = vector.shape_cast %219 : vector<1x8x128xf32> to vector<8x128xf32>
    %221 = arith.index_cast %c7_i32 : i32 to index
    %c8_127 = arith.constant 8 : index
    %c0_128 = arith.constant 0 : index
    %222 = vector.load %arg3[%221, %c8_127, %c0_128] : memref<8x16x128xf32, #tpu.memory_space<vmem>>, vector<1x8x128xf32>
    %223 = vector.shape_cast %222 : vector<1x8x128xf32> to vector<8x128xf32>
    %cst_129 = arith.constant dense<0.000000e+00> : vector<8x128xf32>
    %224 = tpu.matmul %220, %0, %cst_129 {dimension_numbers = #tpu.dot_dimension_numbers<[1], [0], [0], [1], [0, 0, 1, 1], [], []>} : vector<8x128xf32>, vector<128x128xf32>, vector<8x128xf32> -> vector<8x128xf32>
    %225 = arith.addf %224, %3 : vector<8x128xf32>
    %cst_130 = arith.constant 0.000000e+00 : f32
    %226 = vector.broadcast %cst_130 : f32 to vector<8x128xf32>
    %227 = arith.maximumf %225, %226 : vector<8x128xf32>
    %228 = arith.addf %227, %223 : vector<8x128xf32>
    %229 = arith.index_cast %c7_i32 : i32 to index
    %c8_131 = arith.constant 8 : index
    %c0_132 = arith.constant 0 : index
    %230 = vector.load %arg4[%229, %c8_131, %c0_132] : memref<8x16x128xf32, #tpu.memory_space<vmem>>, vector<1x8x128xf32>
    %231 = vector.shape_cast %230 : vector<1x8x128xf32> to vector<8x128xf32>
    %232 = vector.shape_cast %228 : vector<8x128xf32> to vector<1x8x128xf32>
    tpu.vector_store %arg4[%229, %c8_131, %c0_132], %232 {strides = array<i32>} : memref<8x16x128xf32, #tpu.memory_space<vmem>>, vector<1x8x128xf32>,
    %c7_i32_133 = arith.constant 7 : i32
    %c0_i32 = arith.constant 0 : i32
    %c6_i32_134 = arith.constant 6 : i32
    %233 = arith.subi %c6_i32_134, %c0_i32 : i32
    %c1_i32_135 = arith.constant 1 : i32
    %234 = arith.addi %233, %c1_i32_135 : i32
    %235 = arith.index_cast %234 : i32 to index
    %c0_136 = arith.constant 0 : index
    %c0_137 = arith.constant 0 : index
    %236 = vector.load %arg4[%235, %c0_136, %c0_137] : memref<8x16x128xf32, #tpu.memory_space<vmem>>, vector<1x8x128xf32>
    %237 = vector.shape_cast %236 : vector<1x8x128xf32> to vector<8x128xf32>
    %238 = arith.index_cast %233 : i32 to index
    %c0_138 = arith.constant 0 : index
    %c0_139 = arith.constant 0 : index
    %239 = vector.load %arg4[%238, %c0_138, %c0_139] : memref<8x16x128xf32, #tpu.memory_space<vmem>>, vector<1x8x128xf32>
    %240 = vector.shape_cast %239 : vector<1x8x128xf32> to vector<8x128xf32>
    %cst_140 = arith.constant dense<0.000000e+00> : vector<8x128xf32>
    %241 = tpu.matmul %237, %0, %cst_140 {dimension_numbers = #tpu.dot_dimension_numbers<[1], [0], [0], [1], [0, 0, 1, 1], [], []>} : vector<8x128xf32>, vector<128x128xf32>, vector<8x128xf32> -> vector<8x128xf32>
    %242 = arith.addf %241, %3 : vector<8x128xf32>
    %cst_141 = arith.constant 0.000000e+00 : f32
    %243 = vector.broadcast %cst_141 : f32 to vector<8x128xf32>
    %244 = arith.maximumf %242, %243 : vector<8x128xf32>
    %245 = arith.addf %244, %240 : vector<8x128xf32>
    %246 = arith.index_cast %233 : i32 to index
    %c0_142 = arith.constant 0 : index
    %c0_143 = arith.constant 0 : index
    %247 = vector.load %arg4[%246, %c0_142, %c0_143] : memref<8x16x128xf32, #tpu.memory_space<vmem>>, vector<1x8x128xf32>
    %248 = vector.shape_cast %247 : vector<1x8x128xf32> to vector<8x128xf32>
    %249 = vector.shape_cast %245 : vector<8x128xf32> to vector<1x8x128xf32>
    tpu.vector_store %arg4[%246, %c0_142, %c0_143], %249 {strides = array<i32>} : memref<8x16x128xf32, #tpu.memory_space<vmem>>, vector<1x8x128xf32>,
    %c1_i32_144 = arith.constant 1 : i32
    %250 = arith.addi %233, %c1_i32_144 : i32
    %251 = arith.index_cast %250 : i32 to index
    %c8_145 = arith.constant 8 : index
    %c0_146 = arith.constant 0 : index
    %252 = vector.load %arg4[%251, %c8_145, %c0_146] : memref<8x16x128xf32, #tpu.memory_space<vmem>>, vector<1x8x128xf32>
    %253 = vector.shape_cast %252 : vector<1x8x128xf32> to vector<8x128xf32>
    %254 = arith.index_cast %233 : i32 to index
    %c8_147 = arith.constant 8 : index
    %c0_148 = arith.constant 0 : index
    %255 = vector.load %arg4[%254, %c8_147, %c0_148] : memref<8x16x128xf32, #tpu.memory_space<vmem>>, vector<1x8x128xf32>
    %256 = vector.shape_cast %255 : vector<1x8x128xf32> to vector<8x128xf32>
    %cst_149 = arith.constant dense<0.000000e+00> : vector<8x128xf32>
    %257 = tpu.matmul %253, %0, %cst_149 {dimension_numbers = #tpu.dot_dimension_numbers<[1], [0], [0], [1], [0, 0, 1, 1], [], []>} : vector<8x128xf32>, vector<128x128xf32>, vector<8x128xf32> -> vector<8x128xf32>
    %258 = arith.addf %257, %3 : vector<8x128xf32>
    %cst_150 = arith.constant 0.000000e+00 : f32
    %259 = vector.broadcast %cst_150 : f32 to vector<8x128xf32>
    %260 = arith.maximumf %258, %259 : vector<8x128xf32>
    %261 = arith.addf %260, %256 : vector<8x128xf32>
    %262 = arith.index_cast %233 : i32 to index
    %c8_151 = arith.constant 8 : index
    %c0_152 = arith.constant 0 : index
    %263 = vector.load %arg4[%262, %c8_151, %c0_152] : memref<8x16x128xf32, #tpu.memory_space<vmem>>, vector<1x8x128xf32>
    %264 = vector.shape_cast %263 : vector<1x8x128xf32> to vector<8x128xf32>
    %265 = vector.shape_cast %261 : vector<8x128xf32> to vector<1x8x128xf32>
    tpu.vector_store %arg4[%262, %c8_151, %c0_152], %265 {strides = array<i32>} : memref<8x16x128xf32, #tpu.memory_space<vmem>>, vector<1x8x128xf32>,
    %c1_i32_153 = arith.constant 1 : i32
    %c6_i32_154 = arith.constant 6 : i32
    %266 = arith.subi %c6_i32_154, %c1_i32_153 : i32
    %c1_i32_155 = arith.constant 1 : i32
    %267 = arith.addi %266, %c1_i32_155 : i32
    %268 = arith.index_cast %267 : i32 to index
    %c0_156 = arith.constant 0 : index
    %c0_157 = arith.constant 0 : index
    %269 = vector.load %arg4[%268, %c0_156, %c0_157] : memref<8x16x128xf32, #tpu.memory_space<vmem>>, vector<1x8x128xf32>
    %270 = vector.shape_cast %269 : vector<1x8x128xf32> to vector<8x128xf32>
    %271 = arith.index_cast %266 : i32 to index
    %c0_158 = arith.constant 0 : index
    %c0_159 = arith.constant 0 : index
    %272 = vector.load %arg4[%271, %c0_158, %c0_159] : memref<8x16x128xf32, #tpu.memory_space<vmem>>, vector<1x8x128xf32>
    %273 = vector.shape_cast %272 : vector<1x8x128xf32> to vector<8x128xf32>
    %cst_160 = arith.constant dense<0.000000e+00> : vector<8x128xf32>
    %274 = tpu.matmul %270, %0, %cst_160 {dimension_numbers = #tpu.dot_dimension_numbers<[1], [0], [0], [1], [0, 0, 1, 1], [], []>} : vector<8x128xf32>, vector<128x128xf32>, vector<8x128xf32> -> vector<8x128xf32>
    %275 = arith.addf %274, %3 : vector<8x128xf32>
    %cst_161 = arith.constant 0.000000e+00 : f32
    %276 = vector.broadcast %cst_161 : f32 to vector<8x128xf32>
    %277 = arith.maximumf %275, %276 : vector<8x128xf32>
    %278 = arith.addf %277, %273 : vector<8x128xf32>
    %279 = arith.index_cast %266 : i32 to index
    %c0_162 = arith.constant 0 : index
    %c0_163 = arith.constant 0 : index
    %280 = vector.load %arg4[%279, %c0_162, %c0_163] : memref<8x16x128xf32, #tpu.memory_space<vmem>>, vector<1x8x128xf32>
    %281 = vector.shape_cast %280 : vector<1x8x128xf32> to vector<8x128xf32>
    %282 = vector.shape_cast %278 : vector<8x128xf32> to vector<1x8x128xf32>
    tpu.vector_store %arg4[%279, %c0_162, %c0_163], %282 {strides = array<i32>} : memref<8x16x128xf32, #tpu.memory_space<vmem>>, vector<1x8x128xf32>,
    %c1_i32_164 = arith.constant 1 : i32
    %283 = arith.addi %266, %c1_i32_164 : i32
    %284 = arith.index_cast %283 : i32 to index
    %c8_165 = arith.constant 8 : index
    %c0_166 = arith.constant 0 : index
    %285 = vector.load %arg4[%284, %c8_165, %c0_166] : memref<8x16x128xf32, #tpu.memory_space<vmem>>, vector<1x8x128xf32>
    %286 = vector.shape_cast %285 : vector<1x8x128xf32> to vector<8x128xf32>
    %287 = arith.index_cast %266 : i32 to index
    %c8_167 = arith.constant 8 : index
    %c0_168 = arith.constant 0 : index
    %288 = vector.load %arg4[%287, %c8_167, %c0_168] : memref<8x16x128xf32, #tpu.memory_space<vmem>>, vector<1x8x128xf32>
    %289 = vector.shape_cast %288 : vector<1x8x128xf32> to vector<8x128xf32>
    %cst_169 = arith.constant dense<0.000000e+00> : vector<8x128xf32>
    %290 = tpu.matmul %286, %0, %cst_169 {dimension_numbers = #tpu.dot_dimension_numbers<[1], [0], [0], [1], [0, 0, 1, 1], [], []>} : vector<8x128xf32>, vector<128x128xf32>, vector<8x128xf32> -> vector<8x128xf32>
    %291 = arith.addf %290, %3 : vector<8x128xf32>
    %cst_170 = arith.constant 0.000000e+00 : f32
    %292 = vector.broadcast %cst_170 : f32 to vector<8x128xf32>
    %293 = arith.maximumf %291, %292 : vector<8x128xf32>
    %294 = arith.addf %293, %289 : vector<8x128xf32>
    %295 = arith.index_cast %266 : i32 to index
    %c8_171 = arith.constant 8 : index
    %c0_172 = arith.constant 0 : index
    %296 = vector.load %arg4[%295, %c8_171, %c0_172] : memref<8x16x128xf32, #tpu.memory_space<vmem>>, vector<1x8x128xf32>
    %297 = vector.shape_cast %296 : vector<1x8x128xf32> to vector<8x128xf32>
    %298 = vector.shape_cast %294 : vector<8x128xf32> to vector<1x8x128xf32>
    tpu.vector_store %arg4[%295, %c8_171, %c0_172], %298 {strides = array<i32>} : memref<8x16x128xf32, #tpu.memory_space<vmem>>, vector<1x8x128xf32>,
    %c2_i32_173 = arith.constant 2 : i32
    %c6_i32_174 = arith.constant 6 : i32
    %299 = arith.subi %c6_i32_174, %c2_i32_173 : i32
    %c1_i32_175 = arith.constant 1 : i32
    %300 = arith.addi %299, %c1_i32_175 : i32
    %301 = arith.index_cast %300 : i32 to index
    %c0_176 = arith.constant 0 : index
    %c0_177 = arith.constant 0 : index
    %302 = vector.load %arg4[%301, %c0_176, %c0_177] : memref<8x16x128xf32, #tpu.memory_space<vmem>>, vector<1x8x128xf32>
    %303 = vector.shape_cast %302 : vector<1x8x128xf32> to vector<8x128xf32>
    %304 = arith.index_cast %299 : i32 to index
    %c0_178 = arith.constant 0 : index
    %c0_179 = arith.constant 0 : index
    %305 = vector.load %arg4[%304, %c0_178, %c0_179] : memref<8x16x128xf32, #tpu.memory_space<vmem>>, vector<1x8x128xf32>
    %306 = vector.shape_cast %305 : vector<1x8x128xf32> to vector<8x128xf32>
    %cst_180 = arith.constant dense<0.000000e+00> : vector<8x128xf32>
    %307 = tpu.matmul %303, %0, %cst_180 {dimension_numbers = #tpu.dot_dimension_numbers<[1], [0], [0], [1], [0, 0, 1, 1], [], []>} : vector<8x128xf32>, vector<128x128xf32>, vector<8x128xf32> -> vector<8x128xf32>
    %308 = arith.addf %307, %3 : vector<8x128xf32>
    %cst_181 = arith.constant 0.000000e+00 : f32
    %309 = vector.broadcast %cst_181 : f32 to vector<8x128xf32>
    %310 = arith.maximumf %308, %309 : vector<8x128xf32>
    %311 = arith.addf %310, %306 : vector<8x128xf32>
    %312 = arith.index_cast %299 : i32 to index
    %c0_182 = arith.constant 0 : index
    %c0_183 = arith.constant 0 : index
    %313 = vector.load %arg4[%312, %c0_182, %c0_183] : memref<8x16x128xf32, #tpu.memory_space<vmem>>, vector<1x8x128xf32>
    %314 = vector.shape_cast %313 : vector<1x8x128xf32> to vector<8x128xf32>
    %315 = vector.shape_cast %311 : vector<8x128xf32> to vector<1x8x128xf32>
    tpu.vector_store %arg4[%312, %c0_182, %c0_183], %315 {strides = array<i32>} : memref<8x16x128xf32, #tpu.memory_space<vmem>>, vector<1x8x128xf32>,
    %c1_i32_184 = arith.constant 1 : i32
    %316 = arith.addi %299, %c1_i32_184 : i32
    %317 = arith.index_cast %316 : i32 to index
    %c8_185 = arith.constant 8 : index
    %c0_186 = arith.constant 0 : index
    %318 = vector.load %arg4[%317, %c8_185, %c0_186] : memref<8x16x128xf32, #tpu.memory_space<vmem>>, vector<1x8x128xf32>
    %319 = vector.shape_cast %318 : vector<1x8x128xf32> to vector<8x128xf32>
    %320 = arith.index_cast %299 : i32 to index
    %c8_187 = arith.constant 8 : index
    %c0_188 = arith.constant 0 : index
    %321 = vector.load %arg4[%320, %c8_187, %c0_188] : memref<8x16x128xf32, #tpu.memory_space<vmem>>, vector<1x8x128xf32>
    %322 = vector.shape_cast %321 : vector<1x8x128xf32> to vector<8x128xf32>
    %cst_189 = arith.constant dense<0.000000e+00> : vector<8x128xf32>
    %323 = tpu.matmul %319, %0, %cst_189 {dimension_numbers = #tpu.dot_dimension_numbers<[1], [0], [0], [1], [0, 0, 1, 1], [], []>} : vector<8x128xf32>, vector<128x128xf32>, vector<8x128xf32> -> vector<8x128xf32>
    %324 = arith.addf %323, %3 : vector<8x128xf32>
    %cst_190 = arith.constant 0.000000e+00 : f32
    %325 = vector.broadcast %cst_190 : f32 to vector<8x128xf32>
    %326 = arith.maximumf %324, %325 : vector<8x128xf32>
    %327 = arith.addf %326, %322 : vector<8x128xf32>
    %328 = arith.index_cast %299 : i32 to index
    %c8_191 = arith.constant 8 : index
    %c0_192 = arith.constant 0 : index
    %329 = vector.load %arg4[%328, %c8_191, %c0_192] : memref<8x16x128xf32, #tpu.memory_space<vmem>>, vector<1x8x128xf32>
    %330 = vector.shape_cast %329 : vector<1x8x128xf32> to vector<8x128xf32>
    %331 = vector.shape_cast %327 : vector<8x128xf32> to vector<1x8x128xf32>
    tpu.vector_store %arg4[%328, %c8_191, %c0_192], %331 {strides = array<i32>} : memref<8x16x128xf32, #tpu.memory_space<vmem>>, vector<1x8x128xf32>,
    %c3_i32_193 = arith.constant 3 : i32
    %c6_i32_194 = arith.constant 6 : i32
    %332 = arith.subi %c6_i32_194, %c3_i32_193 : i32
    %c1_i32_195 = arith.constant 1 : i32
    %333 = arith.addi %332, %c1_i32_195 : i32
    %334 = arith.index_cast %333 : i32 to index
    %c0_196 = arith.constant 0 : index
    %c0_197 = arith.constant 0 : index
    %335 = vector.load %arg4[%334, %c0_196, %c0_197] : memref<8x16x128xf32, #tpu.memory_space<vmem>>, vector<1x8x128xf32>
    %336 = vector.shape_cast %335 : vector<1x8x128xf32> to vector<8x128xf32>
    %337 = arith.index_cast %332 : i32 to index
    %c0_198 = arith.constant 0 : index
    %c0_199 = arith.constant 0 : index
    %338 = vector.load %arg4[%337, %c0_198, %c0_199] : memref<8x16x128xf32, #tpu.memory_space<vmem>>, vector<1x8x128xf32>
    %339 = vector.shape_cast %338 : vector<1x8x128xf32> to vector<8x128xf32>
    %cst_200 = arith.constant dense<0.000000e+00> : vector<8x128xf32>
    %340 = tpu.matmul %336, %0, %cst_200 {dimension_numbers = #tpu.dot_dimension_numbers<[1], [0], [0], [1], [0, 0, 1, 1], [], []>} : vector<8x128xf32>, vector<128x128xf32>, vector<8x128xf32> -> vector<8x128xf32>
    %341 = arith.addf %340, %3 : vector<8x128xf32>
    %cst_201 = arith.constant 0.000000e+00 : f32
    %342 = vector.broadcast %cst_201 : f32 to vector<8x128xf32>
    %343 = arith.maximumf %341, %342 : vector<8x128xf32>
    %344 = arith.addf %343, %339 : vector<8x128xf32>
    %345 = arith.index_cast %332 : i32 to index
    %c0_202 = arith.constant 0 : index
    %c0_203 = arith.constant 0 : index
    %346 = vector.load %arg4[%345, %c0_202, %c0_203] : memref<8x16x128xf32, #tpu.memory_space<vmem>>, vector<1x8x128xf32>
    %347 = vector.shape_cast %346 : vector<1x8x128xf32> to vector<8x128xf32>
    %348 = vector.shape_cast %344 : vector<8x128xf32> to vector<1x8x128xf32>
    tpu.vector_store %arg4[%345, %c0_202, %c0_203], %348 {strides = array<i32>} : memref<8x16x128xf32, #tpu.memory_space<vmem>>, vector<1x8x128xf32>,
    %c1_i32_204 = arith.constant 1 : i32
    %349 = arith.addi %332, %c1_i32_204 : i32
    %350 = arith.index_cast %349 : i32 to index
    %c8_205 = arith.constant 8 : index
    %c0_206 = arith.constant 0 : index
    %351 = vector.load %arg4[%350, %c8_205, %c0_206] : memref<8x16x128xf32, #tpu.memory_space<vmem>>, vector<1x8x128xf32>
    %352 = vector.shape_cast %351 : vector<1x8x128xf32> to vector<8x128xf32>
    %353 = arith.index_cast %332 : i32 to index
    %c8_207 = arith.constant 8 : index
    %c0_208 = arith.constant 0 : index
    %354 = vector.load %arg4[%353, %c8_207, %c0_208] : memref<8x16x128xf32, #tpu.memory_space<vmem>>, vector<1x8x128xf32>
    %355 = vector.shape_cast %354 : vector<1x8x128xf32> to vector<8x128xf32>
    %cst_209 = arith.constant dense<0.000000e+00> : vector<8x128xf32>
    %356 = tpu.matmul %352, %0, %cst_209 {dimension_numbers = #tpu.dot_dimension_numbers<[1], [0], [0], [1], [0, 0, 1, 1], [], []>} : vector<8x128xf32>, vector<128x128xf32>, vector<8x128xf32> -> vector<8x128xf32>
    %357 = arith.addf %356, %3 : vector<8x128xf32>
    %cst_210 = arith.constant 0.000000e+00 : f32
    %358 = vector.broadcast %cst_210 : f32 to vector<8x128xf32>
    %359 = arith.maximumf %357, %358 : vector<8x128xf32>
    %360 = arith.addf %359, %355 : vector<8x128xf32>
    %361 = arith.index_cast %332 : i32 to index
    %c8_211 = arith.constant 8 : index
    %c0_212 = arith.constant 0 : index
    %362 = vector.load %arg4[%361, %c8_211, %c0_212] : memref<8x16x128xf32, #tpu.memory_space<vmem>>, vector<1x8x128xf32>
    %363 = vector.shape_cast %362 : vector<1x8x128xf32> to vector<8x128xf32>
    %364 = vector.shape_cast %360 : vector<8x128xf32> to vector<1x8x128xf32>
    tpu.vector_store %arg4[%361, %c8_211, %c0_212], %364 {strides = array<i32>} : memref<8x16x128xf32, #tpu.memory_space<vmem>>, vector<1x8x128xf32>,
    %c4_i32_213 = arith.constant 4 : i32
    %c6_i32_214 = arith.constant 6 : i32
    %365 = arith.subi %c6_i32_214, %c4_i32_213 : i32
    %c1_i32_215 = arith.constant 1 : i32
    %366 = arith.addi %365, %c1_i32_215 : i32
    %367 = arith.index_cast %366 : i32 to index
    %c0_216 = arith.constant 0 : index
    %c0_217 = arith.constant 0 : index
    %368 = vector.load %arg4[%367, %c0_216, %c0_217] : memref<8x16x128xf32, #tpu.memory_space<vmem>>, vector<1x8x128xf32>
    %369 = vector.shape_cast %368 : vector<1x8x128xf32> to vector<8x128xf32>
    %370 = arith.index_cast %365 : i32 to index
    %c0_218 = arith.constant 0 : index
    %c0_219 = arith.constant 0 : index
    %371 = vector.load %arg4[%370, %c0_218, %c0_219] : memref<8x16x128xf32, #tpu.memory_space<vmem>>, vector<1x8x128xf32>
    %372 = vector.shape_cast %371 : vector<1x8x128xf32> to vector<8x128xf32>
    %cst_220 = arith.constant dense<0.000000e+00> : vector<8x128xf32>
    %373 = tpu.matmul %369, %0, %cst_220 {dimension_numbers = #tpu.dot_dimension_numbers<[1], [0], [0], [1], [0, 0, 1, 1], [], []>} : vector<8x128xf32>, vector<128x128xf32>, vector<8x128xf32> -> vector<8x128xf32>
    %374 = arith.addf %373, %3 : vector<8x128xf32>
    %cst_221 = arith.constant 0.000000e+00 : f32
    %375 = vector.broadcast %cst_221 : f32 to vector<8x128xf32>
    %376 = arith.maximumf %374, %375 : vector<8x128xf32>
    %377 = arith.addf %376, %372 : vector<8x128xf32>
    %378 = arith.index_cast %365 : i32 to index
    %c0_222 = arith.constant 0 : index
    %c0_223 = arith.constant 0 : index
    %379 = vector.load %arg4[%378, %c0_222, %c0_223] : memref<8x16x128xf32, #tpu.memory_space<vmem>>, vector<1x8x128xf32>
    %380 = vector.shape_cast %379 : vector<1x8x128xf32> to vector<8x128xf32>
    %381 = vector.shape_cast %377 : vector<8x128xf32> to vector<1x8x128xf32>
    tpu.vector_store %arg4[%378, %c0_222, %c0_223], %381 {strides = array<i32>} : memref<8x16x128xf32, #tpu.memory_space<vmem>>, vector<1x8x128xf32>,
    %c1_i32_224 = arith.constant 1 : i32
    %382 = arith.addi %365, %c1_i32_224 : i32
    %383 = arith.index_cast %382 : i32 to index
    %c8_225 = arith.constant 8 : index
    %c0_226 = arith.constant 0 : index
    %384 = vector.load %arg4[%383, %c8_225, %c0_226] : memref<8x16x128xf32, #tpu.memory_space<vmem>>, vector<1x8x128xf32>
    %385 = vector.shape_cast %384 : vector<1x8x128xf32> to vector<8x128xf32>
    %386 = arith.index_cast %365 : i32 to index
    %c8_227 = arith.constant 8 : index
    %c0_228 = arith.constant 0 : index
    %387 = vector.load %arg4[%386, %c8_227, %c0_228] : memref<8x16x128xf32, #tpu.memory_space<vmem>>, vector<1x8x128xf32>
    %388 = vector.shape_cast %387 : vector<1x8x128xf32> to vector<8x128xf32>
    %cst_229 = arith.constant dense<0.000000e+00> : vector<8x128xf32>
    %389 = tpu.matmul %385, %0, %cst_229 {dimension_numbers = #tpu.dot_dimension_numbers<[1], [0], [0], [1], [0, 0, 1, 1], [], []>} : vector<8x128xf32>, vector<128x128xf32>, vector<8x128xf32> -> vector<8x128xf32>
    %390 = arith.addf %389, %3 : vector<8x128xf32>
    %cst_230 = arith.constant 0.000000e+00 : f32
    %391 = vector.broadcast %cst_230 : f32 to vector<8x128xf32>
    %392 = arith.maximumf %390, %391 : vector<8x128xf32>
    %393 = arith.addf %392, %388 : vector<8x128xf32>
    %394 = arith.index_cast %365 : i32 to index
    %c8_231 = arith.constant 8 : index
    %c0_232 = arith.constant 0 : index
    %395 = vector.load %arg4[%394, %c8_231, %c0_232] : memref<8x16x128xf32, #tpu.memory_space<vmem>>, vector<1x8x128xf32>
    %396 = vector.shape_cast %395 : vector<1x8x128xf32> to vector<8x128xf32>
    %397 = vector.shape_cast %393 : vector<8x128xf32> to vector<1x8x128xf32>
    tpu.vector_store %arg4[%394, %c8_231, %c0_232], %397 {strides = array<i32>} : memref<8x16x128xf32, #tpu.memory_space<vmem>>, vector<1x8x128xf32>,
    %c5_i32_233 = arith.constant 5 : i32
    %c6_i32_234 = arith.constant 6 : i32
    %398 = arith.subi %c6_i32_234, %c5_i32_233 : i32
    %c1_i32_235 = arith.constant 1 : i32
    %399 = arith.addi %398, %c1_i32_235 : i32
    %400 = arith.index_cast %399 : i32 to index
    %c0_236 = arith.constant 0 : index
    %c0_237 = arith.constant 0 : index
    %401 = vector.load %arg4[%400, %c0_236, %c0_237] : memref<8x16x128xf32, #tpu.memory_space<vmem>>, vector<1x8x128xf32>
    %402 = vector.shape_cast %401 : vector<1x8x128xf32> to vector<8x128xf32>
    %403 = arith.index_cast %398 : i32 to index
    %c0_238 = arith.constant 0 : index
    %c0_239 = arith.constant 0 : index
    %404 = vector.load %arg4[%403, %c0_238, %c0_239] : memref<8x16x128xf32, #tpu.memory_space<vmem>>, vector<1x8x128xf32>
    %405 = vector.shape_cast %404 : vector<1x8x128xf32> to vector<8x128xf32>
    %cst_240 = arith.constant dense<0.000000e+00> : vector<8x128xf32>
    %406 = tpu.matmul %402, %0, %cst_240 {dimension_numbers = #tpu.dot_dimension_numbers<[1], [0], [0], [1], [0, 0, 1, 1], [], []>} : vector<8x128xf32>, vector<128x128xf32>, vector<8x128xf32> -> vector<8x128xf32>
    %407 = arith.addf %406, %3 : vector<8x128xf32>
    %cst_241 = arith.constant 0.000000e+00 : f32
    %408 = vector.broadcast %cst_241 : f32 to vector<8x128xf32>
    %409 = arith.maximumf %407, %408 : vector<8x128xf32>
    %410 = arith.addf %409, %405 : vector<8x128xf32>
    %411 = arith.index_cast %398 : i32 to index
    %c0_242 = arith.constant 0 : index
    %c0_243 = arith.constant 0 : index
    %412 = vector.load %arg4[%411, %c0_242, %c0_243] : memref<8x16x128xf32, #tpu.memory_space<vmem>>, vector<1x8x128xf32>
    %413 = vector.shape_cast %412 : vector<1x8x128xf32> to vector<8x128xf32>
    %414 = vector.shape_cast %410 : vector<8x128xf32> to vector<1x8x128xf32>
    tpu.vector_store %arg4[%411, %c0_242, %c0_243], %414 {strides = array<i32>} : memref<8x16x128xf32, #tpu.memory_space<vmem>>, vector<1x8x128xf32>,
    %c1_i32_244 = arith.constant 1 : i32
    %415 = arith.addi %398, %c1_i32_244 : i32
    %416 = arith.index_cast %415 : i32 to index
    %c8_245 = arith.constant 8 : index
    %c0_246 = arith.constant 0 : index
    %417 = vector.load %arg4[%416, %c8_245, %c0_246] : memref<8x16x128xf32, #tpu.memory_space<vmem>>, vector<1x8x128xf32>
    %418 = vector.shape_cast %417 : vector<1x8x128xf32> to vector<8x128xf32>
    %419 = arith.index_cast %398 : i32 to index
    %c8_247 = arith.constant 8 : index
    %c0_248 = arith.constant 0 : index
    %420 = vector.load %arg4[%419, %c8_247, %c0_248] : memref<8x16x128xf32, #tpu.memory_space<vmem>>, vector<1x8x128xf32>
    %421 = vector.shape_cast %420 : vector<1x8x128xf32> to vector<8x128xf32>
    %cst_249 = arith.constant dense<0.000000e+00> : vector<8x128xf32>
    %422 = tpu.matmul %418, %0, %cst_249 {dimension_numbers = #tpu.dot_dimension_numbers<[1], [0], [0], [1], [0, 0, 1, 1], [], []>} : vector<8x128xf32>, vector<128x128xf32>, vector<8x128xf32> -> vector<8x128xf32>
    %423 = arith.addf %422, %3 : vector<8x128xf32>
    %cst_250 = arith.constant 0.000000e+00 : f32
    %424 = vector.broadcast %cst_250 : f32 to vector<8x128xf32>
    %425 = arith.maximumf %423, %424 : vector<8x128xf32>
    %426 = arith.addf %425, %421 : vector<8x128xf32>
    %427 = arith.index_cast %398 : i32 to index
    %c8_251 = arith.constant 8 : index
    %c0_252 = arith.constant 0 : index
    %428 = vector.load %arg4[%427, %c8_251, %c0_252] : memref<8x16x128xf32, #tpu.memory_space<vmem>>, vector<1x8x128xf32>
    %429 = vector.shape_cast %428 : vector<1x8x128xf32> to vector<8x128xf32>
    %430 = vector.shape_cast %426 : vector<8x128xf32> to vector<1x8x128xf32>
    tpu.vector_store %arg4[%427, %c8_251, %c0_252], %430 {strides = array<i32>} : memref<8x16x128xf32, #tpu.memory_space<vmem>>, vector<1x8x128xf32>,
    %c6_i32_253 = arith.constant 6 : i32
    %c6_i32_254 = arith.constant 6 : i32
    %431 = arith.subi %c6_i32_254, %c6_i32_253 : i32
    %c1_i32_255 = arith.constant 1 : i32
    %432 = arith.addi %431, %c1_i32_255 : i32
    %433 = arith.index_cast %432 : i32 to index
    %c0_256 = arith.constant 0 : index
    %c0_257 = arith.constant 0 : index
    %434 = vector.load %arg4[%433, %c0_256, %c0_257] : memref<8x16x128xf32, #tpu.memory_space<vmem>>, vector<1x8x128xf32>
    %435 = vector.shape_cast %434 : vector<1x8x128xf32> to vector<8x128xf32>
    %436 = arith.index_cast %431 : i32 to index
    %c0_258 = arith.constant 0 : index
    %c0_259 = arith.constant 0 : index
    %437 = vector.load %arg4[%436, %c0_258, %c0_259] : memref<8x16x128xf32, #tpu.memory_space<vmem>>, vector<1x8x128xf32>
    %438 = vector.shape_cast %437 : vector<1x8x128xf32> to vector<8x128xf32>
    %cst_260 = arith.constant dense<0.000000e+00> : vector<8x128xf32>
    %439 = tpu.matmul %435, %0, %cst_260 {dimension_numbers = #tpu.dot_dimension_numbers<[1], [0], [0], [1], [0, 0, 1, 1], [], []>} : vector<8x128xf32>, vector<128x128xf32>, vector<8x128xf32> -> vector<8x128xf32>
    %440 = arith.addf %439, %3 : vector<8x128xf32>
    %cst_261 = arith.constant 0.000000e+00 : f32
    %441 = vector.broadcast %cst_261 : f32 to vector<8x128xf32>
    %442 = arith.maximumf %440, %441 : vector<8x128xf32>
    %443 = arith.addf %442, %438 : vector<8x128xf32>
    %444 = arith.index_cast %431 : i32 to index
    %c0_262 = arith.constant 0 : index
    %c0_263 = arith.constant 0 : index
    %445 = vector.load %arg4[%444, %c0_262, %c0_263] : memref<8x16x128xf32, #tpu.memory_space<vmem>>, vector<1x8x128xf32>
    %446 = vector.shape_cast %445 : vector<1x8x128xf32> to vector<8x128xf32>
    %447 = vector.shape_cast %443 : vector<8x128xf32> to vector<1x8x128xf32>
    tpu.vector_store %arg4[%444, %c0_262, %c0_263], %447 {strides = array<i32>} : memref<8x16x128xf32, #tpu.memory_space<vmem>>, vector<1x8x128xf32>,
    %c1_i32_264 = arith.constant 1 : i32
    %448 = arith.addi %431, %c1_i32_264 : i32
    %449 = arith.index_cast %448 : i32 to index
    %c8_265 = arith.constant 8 : index
    %c0_266 = arith.constant 0 : index
    %450 = vector.load %arg4[%449, %c8_265, %c0_266] : memref<8x16x128xf32, #tpu.memory_space<vmem>>, vector<1x8x128xf32>
    %451 = vector.shape_cast %450 : vector<1x8x128xf32> to vector<8x128xf32>
    %452 = arith.index_cast %431 : i32 to index
    %c8_267 = arith.constant 8 : index
    %c0_268 = arith.constant 0 : index
    %453 = vector.load %arg4[%452, %c8_267, %c0_268] : memref<8x16x128xf32, #tpu.memory_space<vmem>>, vector<1x8x128xf32>
    %454 = vector.shape_cast %453 : vector<1x8x128xf32> to vector<8x128xf32>
    %cst_269 = arith.constant dense<0.000000e+00> : vector<8x128xf32>
    %455 = tpu.matmul %451, %0, %cst_269 {dimension_numbers = #tpu.dot_dimension_numbers<[1], [0], [0], [1], [0, 0, 1, 1], [], []>} : vector<8x128xf32>, vector<128x128xf32>, vector<8x128xf32> -> vector<8x128xf32>
    %456 = arith.addf %455, %3 : vector<8x128xf32>
    %cst_270 = arith.constant 0.000000e+00 : f32
    %457 = vector.broadcast %cst_270 : f32 to vector<8x128xf32>
    %458 = arith.maximumf %456, %457 : vector<8x128xf32>
    %459 = arith.addf %458, %454 : vector<8x128xf32>
    %460 = arith.index_cast %431 : i32 to index
    %c8_271 = arith.constant 8 : index
    %c0_272 = arith.constant 0 : index
    %461 = vector.load %arg4[%460, %c8_271, %c0_272] : memref<8x16x128xf32, #tpu.memory_space<vmem>>, vector<1x8x128xf32>
    %462 = vector.shape_cast %461 : vector<1x8x128xf32> to vector<8x128xf32>
    %463 = vector.shape_cast %459 : vector<8x128xf32> to vector<1x8x128xf32>
    tpu.vector_store %arg4[%460, %c8_271, %c0_272], %463 {strides = array<i32>} : memref<8x16x128xf32, #tpu.memory_space<vmem>>, vector<1x8x128xf32>,
    %c7_i32_273 = arith.constant 7 : i32
    return
  }
  func.func @transform_0(%arg0: i32) -> (i32, i32) {
    %c0_i32 = arith.constant 0 : i32
    %c0_i32_0 = arith.constant 0 : i32
    %c0_i32_1 = arith.constant 0 : i32
    return %c0_i32, %c0_i32_0 : i32, i32
  }
  func.func @transform_1(%arg0: i32) -> (i32, i32) {
    %c0_i32 = arith.constant 0 : i32
    %c0_i32_0 = arith.constant 0 : i32
    %c0_i32_1 = arith.constant 0 : i32
    return %c0_i32, %c0_i32_0 : i32, i32
  }
  func.func @transform_2(%arg0: i32) -> (i32, i32, i32) {
    %c0_i32 = arith.constant 0 : i32
    %c0_i32_0 = arith.constant 0 : i32
    %c0_i32_1 = arith.constant 0 : i32
    return %c0_i32, %arg0, %c0_i32_0 : i32, i32, i32
  }
  func.func @transform_3(%arg0: i32) -> (i32, i32, i32) {
    %c0_i32 = arith.constant 0 : i32
    %c0_i32_0 = arith.constant 0 : i32
    %c0_i32_1 = arith.constant 0 : i32
    return %c0_i32, %arg0, %c0_i32_0 : i32, i32, i32
  }
}

</mosaic_0001>

<bundles_post_ra>
// kernel: conv_lr_forward.1
= control target key start
LH: loop header
LB: loop body
LE: loop exit
PB: predicated region body
PF: predicated region fallthrough
CT: control target
= control target key end

     0   :  { %v3713_v0 = vmov 0.0   ;;  %vm3714_vm0 = vmmov 0   ;;  %s5061_s0 = inlined_call_operand.vmem [shape: f32[128,128], index: 0, kind: input, shape index: {}]   ;;  %s5062_s2 = inlined_call_operand.vmem [shape: f32[8,16,128], index: 2, kind: input, shape index: {}, may-alias: {2,3}]   ;;  %s5063_s3 = inlined_call_operand.vmem [shape: f32[8,16,128], index: 3, kind: output, shape index: {}, may-alias: {2,3}]   ;;  %s5064_s1 = inlined_call_operand.vmem [shape: f32[1,128], index: 1, kind: input, shape index: {}]  }
   0x1   :  { %2714 = vmatprep.subr.mxu0 %v3713_v0  ;;  %2749 = vmatprep.subr.mxu1 %v3713_v0  ;;  %v3740_v1 = vld [vmem:[%s5061_s0 + $0x78] sm:$0xff]  ;;  %v3745_v2 = vld [vmem:[%s5061_s0 + $0x70] sm:$0xff]  ;;  %v3754_v3 = vld [vmem:[%s5061_s0 + $0x68] sm:$0xff] }
   0x2   :  { %2715 = vmatpush3.msra.mxu0 %v3740_v1  ;;  %2750 = vmatpush3.msra.mxu1 %v3740_v1  ;;  %v3763_v4 = vld [vmem:[%s5061_s0 + $0x60] sm:$0xff]  ;;  %v3775_v6 = vld [vmem:[%s5062_s2 + $0x8] sm:$0xff]  ;;  %v3782_v7 = vld [vmem:[%s5061_s0 + $0x58] sm:$0xff] }
   0x3   :  { %2716 = vmatprep.subr.mxu0 %v3713_v0  ;;  %2751 = vmatprep.subr.mxu1 %v3713_v0  ;;  %v3770_v5 = vld [vmem:[%s5062_s2] sm:$0xff]  ;;  %v3799_v8 = vld [vmem:[%s5061_s0 + $0x50] sm:$0xff]  ;;  %v3808_v9 = vld [vmem:[%s5061_s0 + $0x48] sm:$0xff] }
   0x4   :  { %2717 = vmatpush3.msra.mxu0 %v3745_v2  ;;  %2752 = vmatpush3.msra.mxu1 %v3745_v2  ;;  %39 = vst [vmem:[%s5063_s3] sm:$0xff] %v3770_v5  ;;  %40 = vst [vmem:[%s5063_s3 + $0x8] sm:$0xff] %v3775_v6  ;;  %v3817_v10 = vld [vmem:[%s5061_s0 + $0x40] sm:$0xff]  ;;  %v3826_v11 = vld [vmem:[%s5061_s0 + $0x38] sm:$0xff] }
   0x5   :  { %2718 = vmatprep.subr.mxu0 %v3713_v0  ;;  %2753 = vmatprep.subr.mxu1 %v3713_v0  ;;  %v3835_v12 = vld [vmem:[%s5061_s0 + $0x30] sm:$0xff]  ;;  %v3844_v13 = vld [vmem:[%s5061_s0 + $0x28] sm:$0xff]  ;;  %v3853_v14 = vld [vmem:[%s5061_s0 + $0x20] sm:$0xff] }
   0x6   :  { %2719 = vmatpush3.msra.mxu0 %v3754_v3  ;;  %2754 = vmatpush3.msra.mxu1 %v3754_v3  ;;  %v3862_v15 = vld [vmem:[%s5061_s0 + $0x18] sm:$0xff]  ;;  %v3871_v16 = vld [vmem:[%s5061_s0 + $0x10] sm:$0xff]  ;;  %v3880_v17 = vld [vmem:[%s5061_s0 + $0x8] sm:$0xff] }
   0x7   :  { %2720 = vmatprep.subr.mxu0 %v3713_v0  ;;  %2755 = vmatprep.subr.mxu1 %v3713_v0  ;;  %v3889_v18 = vld [vmem:[%s5061_s0] sm:$0xff] }
   0x8   :  { %2721 = vmatpush3.msra.mxu0 %v3763_v4  ;;  %2756 = vmatpush3.msra.mxu1 %v3763_v4  ;;  %v3976_v19 = vld [vmem:[%s5064_s1] ss:$0 sm:$0xff] }
   0x9   :  { %2722 = vmatprep.subr.mxu0 %v3713_v0  ;;  %2757 = vmatprep.subr.mxu1 %v3713_v0 }
   0xa   :  { %2723 = vmatpush3.msra.mxu0 %v3782_v7  ;;  %2758 = vmatpush3.msra.mxu1 %v3782_v7 }
   0xb   :  { %2724 = vmatprep.subr.mxu0 %v3713_v0  ;;  %2759 = vmatprep.subr.mxu1 %v3713_v0  ;;  %v2160_v24 = vld [vmem:[%s5062_s2 + $0x10] sm:$0xff]  ;;  %v2162_v25 = vld [vmem:[%s5062_s2 + $0x18] sm:$0xff] }
   0xc   :  { %2725 = vmatpush3.msra.mxu0 %v3799_v8  ;;  %2760 = vmatpush3.msra.mxu1 %v3799_v8 }
   0xd   :  { %2726 = vmatprep.subr.mxu0 %v3713_v0  ;;  %2761 = vmatprep.subr.mxu1 %v3713_v0 }
   0xe   :  { %2727 = vmatpush3.msra.mxu0 %v3808_v9  ;;  %2762 = vmatpush3.msra.mxu1 %v3808_v9 }
   0xf   :  { %2728 = vmatprep.subr.mxu0 %v3713_v0  ;;  %2763 = vmatprep.subr.mxu1 %v3713_v0 }
  0x10   :  { %2729 = vmatpush3.msra.mxu0 %v3817_v10  ;;  %2764 = vmatpush3.msra.mxu1 %v3817_v10 }
  0x11   :  { %2730 = vmatprep.subr.mxu0 %v3713_v0  ;;  %2765 = vmatprep.subr.mxu1 %v3713_v0 }
  0x12   :  { %2731 = vmatpush3.msra.mxu0 %v3826_v11  ;;  %2766 = vmatpush3.msra.mxu1 %v3826_v11 }
  0x13   :  { %2732 = vmatprep.subr.mxu0 %v3713_v0  ;;  %2767 = vmatprep.subr.mxu1 %v3713_v0 }
  0x14   :  { %2733 = vmatpush3.msra.mxu0 %v3835_v12  ;;  %2768 = vmatpush3.msra.mxu1 %v3835_v12 }
  0x15   :  { %2734 = vmatprep.subr.mxu0 %v3713_v0  ;;  %2769 = vmatprep.subr.mxu1 %v3713_v0 }
  0x16   :  { %2735 = vmatpush3.msra.mxu0 %v3844_v13  ;;  %2770 = vmatpush3.msra.mxu1 %v3844_v13 }
  0x17   :  { %2736 = vmatprep.subr.mxu0 %v3713_v0  ;;  %2771 = vmatprep.subr.mxu1 %v3713_v0 }
  0x18   :  { %2737 = vmatpush3.msra.mxu0 %v3853_v14  ;;  %2772 = vmatpush3.msra.mxu1 %v3853_v14 }
  0x19   :  { %2738 = vmatprep.subr.mxu0 %v3713_v0  ;;  %2773 = vmatprep.subr.mxu1 %v3713_v0 }
  0x1a   :  { %2739 = vmatpush3.msra.mxu0 %v3862_v15  ;;  %2774 = vmatpush3.msra.mxu1 %v3862_v15 }
  0x1b   :  { %2740 = vmatprep.subr.mxu0 %v3713_v0  ;;  %2775 = vmatprep.subr.mxu1 %v3713_v0 }
  0x1c   :  { %2741 = vmatpush3.msra.mxu0 %v3871_v16  ;;  %2776 = vmatpush3.msra.mxu1 %v3871_v16 }
  0x1d   :  { %2742 = vmatprep.subr.mxu0 %v3713_v0  ;;  %2777 = vmatprep.subr.mxu1 %v3713_v0 }
  0x1e   :  { %2743 = vmatpush3.msra.mxu0 %v3880_v17  ;;  %2778 = vmatpush3.msra.mxu1 %v3880_v17 }
  0x1f   :  { %2744 = vmatprep.subr.mxu0 %v3713_v0  ;;  %2779 = vmatprep.subr.mxu1 %v3713_v0 }
  0x20   :  { %2745 = vmatpush3.msra.mxu0 %v3889_v18  ;;  %2746 = vmatprep.mubr.msk.f32.mxu0 %vm3714_vm0, %v3713_v0 }
  0x21   :  { %2780 = vmatpush3.msra.mxu1 %v3889_v18  ;;  %2781 = vmatprep.mubr.msk.f32.mxu1 %vm3714_vm0, %v3713_v0 }
  0x22   :  { %2747 = vmatmul.mubr.f32.vlgmr.msra.gmra.mxu0 %v3770_v5  ;;  %2782 = vmatmul.mubr.f32.vlgmr.msra.gmra.mxu1 %v3775_v6 }
  0x23   :  { %2784 = vmatprep.subr.mxu0 %v3713_v0  ;;  %2819 = vmatprep.subr.mxu1 %v3713_v0 }
  0x24   :  { %2785 = vmatpush3.msra.mxu0 %v3740_v1  ;;  %2820 = vmatpush3.msra.mxu1 %v3740_v1 }
  0x25   :  { %2786 = vmatprep.subr.mxu0 %v3713_v0  ;;  %2821 = vmatprep.subr.mxu1 %v3713_v0 }
  0x26   :  { %2787 = vmatpush3.msra.mxu0 %v3745_v2  ;;  %2822 = vmatpush3.msra.mxu1 %v3745_v2 }
  0x27   :  { %2788 = vmatprep.subr.mxu0 %v3713_v0  ;;  %2823 = vmatprep.subr.mxu1 %v3713_v0 }
  0x28   :  { %2789 = vmatpush3.msra.mxu0 %v3754_v3  ;;  %2824 = vmatpush3.msra.mxu1 %v3754_v3 }
  0x29   :  { %2790 = vmatprep.subr.mxu0 %v3713_v0  ;;  %2825 = vmatprep.subr.mxu1 %v3713_v0 }
  0x2a   :  { %2791 = vmatpush3.msra.mxu0 %v3763_v4  ;;  %2826 = vmatpush3.msra.mxu1 %v3763_v4 }
  0x2b   :  { %2792 = vmatprep.subr.mxu0 %v3713_v0  ;;  %2827 = vmatprep.subr.mxu1 %v3713_v0 }
  0x2c   :  { %2793 = vmatpush3.msra.mxu0 %v3782_v7  ;;  %2828 = vmatpush3.msra.mxu1 %v3782_v7 }
  0x2d   :  { %2794 = vmatprep.subr.mxu0 %v3713_v0  ;;  %2829 = vmatprep.subr.mxu1 %v3713_v0 }
  0x2e   :  { %2795 = vmatpush3.msra.mxu0 %v3799_v8  ;;  %2830 = vmatpush3.msra.mxu1 %v3799_v8 }
  0x2f   :  { %2796 = vmatprep.subr.mxu0 %v3713_v0  ;;  %2831 = vmatprep.subr.mxu1 %v3713_v0 }
  0x30   :  { %2797 = vmatpush3.msra.mxu0 %v3808_v9  ;;  %2832 = vmatpush3.msra.mxu1 %v3808_v9 }
  0x31   :  { %2798 = vmatprep.subr.mxu0 %v3713_v0  ;;  %2833 = vmatprep.subr.mxu1 %v3713_v0 }
  0x32   :  { %2799 = vmatpush3.msra.mxu0 %v3817_v10  ;;  %2834 = vmatpush3.msra.mxu1 %v3817_v10 }
  0x33   :  { %2800 = vmatprep.subr.mxu0 %v3713_v0  ;;  %2835 = vmatprep.subr.mxu1 %v3713_v0 }
  0x34   :  { %2801 = vmatpush3.msra.mxu0 %v3826_v11  ;;  %2836 = vmatpush3.msra.mxu1 %v3826_v11 }
  0x35   :  { %2802 = vmatprep.subr.mxu0 %v3713_v0  ;;  %2837 = vmatprep.subr.mxu1 %v3713_v0 }
  0x36   :  { %2803 = vmatpush3.msra.mxu0 %v3835_v12  ;;  %2838 = vmatpush3.msra.mxu1 %v3835_v12 }
  0x37   :  { %2804 = vmatprep.subr.mxu0 %v3713_v0  ;;  %2839 = vmatprep.subr.mxu1 %v3713_v0 }
  0x38   :  { %2805 = vmatpush3.msra.mxu0 %v3844_v13  ;;  %2840 = vmatpush3.msra.mxu1 %v3844_v13 }
  0x39   :  { %2806 = vmatprep.subr.mxu0 %v3713_v0  ;;  %2841 = vmatprep.subr.mxu1 %v3713_v0 }
  0x3a   :  { %2807 = vmatpush3.msra.mxu0 %v3853_v14  ;;  %2842 = vmatpush3.msra.mxu1 %v3853_v14 }
  0x3b   :  { %2808 = vmatprep.subr.mxu0 %v3713_v0  ;;  %2843 = vmatprep.subr.mxu1 %v3713_v0 }
  0x3c   :  { %2809 = vmatpush3.msra.mxu0 %v3862_v15  ;;  %2844 = vmatpush3.msra.mxu1 %v3862_v15 }
  0x3d   :  { %2810 = vmatprep.subr.mxu0 %v3713_v0  ;;  %2845 = vmatprep.subr.mxu1 %v3713_v0 }
  0x3e   :  { %2811 = vmatpush3.msra.mxu0 %v3871_v16  ;;  %2846 = vmatpush3.msra.mxu1 %v3871_v16 }
  0x3f   :  { %2812 = vmatprep.subr.mxu0 %v3713_v0  ;;  %2847 = vmatprep.subr.mxu1 %v3713_v0 }
  0x40   :  { %2813 = vmatpush3.msra.mxu0 %v3880_v17  ;;  %2848 = vmatpush3.msra.mxu1 %v3880_v17 }
  0x41   :  { %2814 = vmatprep.subr.mxu0 %v3713_v0  ;;  %2849 = vmatprep.subr.mxu1 %v3713_v0 }
  0x42   :  { %2815 = vmatpush3.msra.mxu0 %v3889_v18  ;;  %2816 = vmatprep.mubr.msk.f32.mxu0 %vm3714_vm0, %v3713_v0 }
  0x43   :  { %2850 = vmatpush3.msra.mxu1 %v3889_v18  ;;  %2851 = vmatprep.mubr.msk.f32.mxu1 %vm3714_vm0, %v3713_v0 }
  0x44   :  { %2854 = vmatprep.subr.mxu0 %v3713_v0  ;;  %2889 = vmatprep.subr.mxu1 %v3713_v0 }
  0xe2   :  { %v110_v20 = vpop.f32.mrf.mxu0  ;;  %v186_v21 = vpop.f32.mrf.mxu1 }
  0xe3   :  { %v111_v22 = vadd.f32 %v3976_v19, %v110_v20  ;;  %v187_v23 = vadd.f32 %v3976_v19, %v186_v21 }
  0xe4   :  { %v2748_v26 = vpop.f32.mrf.mxu0  ;;  %v2783_v27 = vpop.f32.mrf.mxu1 }
  0xe5   :  { %v114_v28 = vmax.f32 %v111_v22, 0.0  ;;  %v190_v29 = vmax.f32 %v187_v23, 0.0 }
  0xe7   :  { %v115_v30 = vadd.f32 %v2160_v24, %v114_v28  ;;  %v191_v31 = vadd.f32 %v2162_v25, %v190_v29 }
  0xe9   :  { %2161 = vst [vmem:[%s5063_s3 + $0x10] sm:$0xff] %v115_v30  ;;  %2163 = vst [vmem:[%s5063_s3 + $0x18] sm:$0xff] %v191_v31  ;;  %2817 = vmatmul.mubr.f32.vlgmr.msra.gmra.mxu0 %v115_v30  ;;  %2852 = vmatmul.mubr.f32.vlgmr.msra.gmra.mxu1 %v191_v31 }
  0xea   :  { %2855 = vmatpush3.msra.mxu0 %v3740_v1  ;;  %2890 = vmatpush3.msra.mxu1 %v3740_v1 }
  0xeb   :  { %2856 = vmatprep.subr.mxu0 %v3713_v0  ;;  %2891 = vmatprep.subr.mxu1 %v3713_v0 }
  0xec   :  { %2857 = vmatpush3.msra.mxu0 %v3745_v2  ;;  %2892 = vmatpush3.msra.mxu1 %v3745_v2 }
  0xed   :  { %2858 = vmatprep.subr.mxu0 %v3713_v0  ;;  %2893 = vmatprep.subr.mxu1 %v3713_v0 }
  0xee   :  { %2859 = vmatpush3.msra.mxu0 %v3754_v3  ;;  %2894 = vmatpush3.msra.mxu1 %v3754_v3 }
  0xef   :  { %2860 = vmatprep.subr.mxu0 %v3713_v0  ;;  %2895 = vmatprep.subr.mxu1 %v3713_v0 }
  0xf0   :  { %2861 = vmatpush3.msra.mxu0 %v3763_v4  ;;  %2896 = vmatpush3.msra.mxu1 %v3763_v4  ;;  %v2165_v36 = vld [vmem:[%s5062_s2 + $0x20] sm:$0xff]  ;;  %v2168_v37 = vld [vmem:[%s5062_s2 + $0x28] sm:$0xff] }
  0xf1   :  { %2862 = vmatprep.subr.mxu0 %v3713_v0  ;;  %2897 = vmatprep.subr.mxu1 %v3713_v0 }
  0xf2   :  { %2863 = vmatpush3.msra.mxu0 %v3782_v7  ;;  %2898 = vmatpush3.msra.mxu1 %v3782_v7 }
  0xf3   :  { %2864 = vmatprep.subr.mxu0 %v3713_v0  ;;  %2899 = vmatprep.subr.mxu1 %v3713_v0 }
  0xf4   :  { %2865 = vmatpush3.msra.mxu0 %v3799_v8  ;;  %2900 = vmatpush3.msra.mxu1 %v3799_v8 }
  0xf5   :  { %2866 = vmatprep.subr.mxu0 %v3713_v0  ;;  %2901 = vmatprep.subr.mxu1 %v3713_v0 }
  0xf6   :  { %2867 = vmatpush3.msra.mxu0 %v3808_v9  ;;  %2902 = vmatpush3.msra.mxu1 %v3808_v9 }
  0xf7   :  { %2868 = vmatprep.subr.mxu0 %v3713_v0  ;;  %2903 = vmatprep.subr.mxu1 %v3713_v0 }
  0xf8   :  { %2869 = vmatpush3.msra.mxu0 %v3817_v10  ;;  %2904 = vmatpush3.msra.mxu1 %v3817_v10 }
  0xf9   :  { %2870 = vmatprep.subr.mxu0 %v3713_v0  ;;  %2905 = vmatprep.subr.mxu1 %v3713_v0 }
  0xfa   :  { %2871 = vmatpush3.msra.mxu0 %v3826_v11  ;;  %2906 = vmatpush3.msra.mxu1 %v3826_v11 }
  0xfb   :  { %2872 = vmatprep.subr.mxu0 %v3713_v0  ;;  %2907 = vmatprep.subr.mxu1 %v3713_v0 }
  0xfc   :  { %2873 = vmatpush3.msra.mxu0 %v3835_v12  ;;  %2908 = vmatpush3.msra.mxu1 %v3835_v12 }
  0xfd   :  { %2874 = vmatprep.subr.mxu0 %v3713_v0  ;;  %2909 = vmatprep.subr.mxu1 %v3713_v0 }
  0xfe   :  { %2875 = vmatpush3.msra.mxu0 %v3844_v13  ;;  %2910 = vmatpush3.msra.mxu1 %v3844_v13 }
  0xff   :  { %2876 = vmatprep.subr.mxu0 %v3713_v0  ;;  %2911 = vmatprep.subr.mxu1 %v3713_v0 }
 0x100   :  { %2877 = vmatpush3.msra.mxu0 %v3853_v14  ;;  %2912 = vmatpush3.msra.mxu1 %v3853_v14 }
 0x101   :  { %2878 = vmatprep.subr.mxu0 %v3713_v0  ;;  %2913 = vmatprep.subr.mxu1 %v3713_v0 }
 0x102   :  { %2879 = vmatpush3.msra.mxu0 %v3862_v15  ;;  %2914 = vmatpush3.msra.mxu1 %v3862_v15 }
 0x103   :  { %2880 = vmatprep.subr.mxu0 %v3713_v0  ;;  %2915 = vmatprep.subr.mxu1 %v3713_v0 }
 0x104   :  { %2881 = vmatpush3.msra.mxu0 %v3871_v16  ;;  %2916 = vmatpush3.msra.mxu1 %v3871_v16 }
 0x105   :  { %2882 = vmatprep.subr.mxu0 %v3713_v0  ;;  %2917 = vmatprep.subr.mxu1 %v3713_v0 }
 0x106   :  { %2883 = vmatpush3.msra.mxu0 %v3880_v17  ;;  %2918 = vmatpush3.msra.mxu1 %v3880_v17 }
 0x107   :  { %2884 = vmatprep.subr.mxu0 %v3713_v0  ;;  %2919 = vmatprep.subr.mxu1 %v3713_v0 }
 0x108   :  { %2885 = vmatpush3.msra.mxu0 %v3889_v18  ;;  %2886 = vmatprep.mubr.msk.f32.mxu0 %vm3714_vm0, %v3713_v0 }
 0x109   :  { %2920 = vmatpush3.msra.mxu1 %v3889_v18  ;;  %2921 = vmatprep.mubr.msk.f32.mxu1 %vm3714_vm0, %v3713_v0 }
 0x10a   :  { %2924 = vmatprep.subr.mxu0 %v3713_v0  ;;  %2959 = vmatprep.subr.mxu1 %v3713_v0 }
 0x1a9   :  { %v262_v32 = vpop.f32.mrf.mxu0  ;;  %v338_v33 = vpop.f32.mrf.mxu1 }
 0x1aa   :  { %v263_v34 = vadd.f32 %v3976_v19, %v262_v32  ;;  %v339_v35 = vadd.f32 %v3976_v19, %v338_v33 }
 0x1ab   :  { %v2818_v38 = vpop.f32.mrf.mxu0  ;;  %v2853_v39 = vpop.f32.mrf.mxu1 }
 0x1ac   :  { %v266_v40 = vmax.f32 %v263_v34, 0.0  ;;  %v342_v41 = vmax.f32 %v339_v35, 0.0  ;;  %v4441_v34 = vld [vmem:[%s5061_s0 + $0x58] sm:$0xff]  ;;  %v4450_v35 = vld [vmem:[%s5061_s0 + $0x50] sm:$0xff] }
 0x1ad   :  { %v4477_v38 = vld [vmem:[%s5061_s0 + $0x38] sm:$0xff]  ;;  %v4486_v39 = vld [vmem:[%s5061_s0 + $0x30] sm:$0xff] }
 0x1ae   :  { %v267_v42 = vadd.f32 %v2165_v36, %v266_v40  ;;  %v343_v43 = vadd.f32 %v2168_v37, %v342_v41  ;;  %v4459_v36 = vld [vmem:[%s5061_s0 + $0x48] sm:$0xff]  ;;  %v4468_v37 = vld [vmem:[%s5061_s0 + $0x40] sm:$0xff] }
 0x1af   :  { %v4495_v40 = vld [vmem:[%s5061_s0 + $0x28] sm:$0xff]  ;;  %v4504_v41 = vld [vmem:[%s5061_s0 + $0x20] sm:$0xff] }
 0x1b0   :  { %2166 = vst [vmem:[%s5063_s3 + $0x20] sm:$0xff] %v267_v42  ;;  %2169 = vst [vmem:[%s5063_s3 + $0x28] sm:$0xff] %v343_v43  ;;  %2887 = vmatmul.mubr.f32.vlgmr.msra.gmra.mxu0 %v267_v42  ;;  %2922 = vmatmul.mubr.f32.vlgmr.msra.gmra.mxu1 %v343_v43  ;;  %v4513_v42 = vld [vmem:[%s5061_s0 + $0x18] sm:$0xff]  ;;  %v4522_v43 = vld [vmem:[%s5061_s0 + $0x10] sm:$0xff] }
 0x1b1   :  { %2925 = vmatpush3.msra.mxu0 %v3740_v1  ;;  %2960 = vmatpush3.msra.mxu1 %v3740_v1 }
 0x1b2   :  { %2926 = vmatprep.subr.mxu0 %v3713_v0  ;;  %2961 = vmatprep.subr.mxu1 %v3713_v0 }
 0x1b3   :  { %2927 = vmatpush3.msra.mxu0 %v3745_v2  ;;  %2962 = vmatpush3.msra.mxu1 %v3745_v2 }
 0x1b4   :  { %2928 = vmatprep.subr.mxu0 %v3713_v0  ;;  %2963 = vmatprep.subr.mxu1 %v3713_v0 }
 0x1b5   :  { %2929 = vmatpush3.msra.mxu0 %v3754_v3  ;;  %2964 = vmatpush3.msra.mxu1 %v3754_v3 }
 0x1b6   :  { %2930 = vmatprep.subr.mxu0 %v3713_v0  ;;  %2965 = vmatprep.subr.mxu1 %v3713_v0 }
 0x1b7   :  { %2931 = vmatpush3.msra.mxu0 %v3763_v4  ;;  %2966 = vmatpush3.msra.mxu1 %v3763_v4  ;;  %v2171_v48 = vld [vmem:[%s5062_s2 + $0x30] sm:$0xff]  ;;  %v2174_v49 = vld [vmem:[%s5062_s2 + $0x38] sm:$0xff] }
 0x1b8   :  { %2932 = vmatprep.subr.mxu0 %v3713_v0  ;;  %2967 = vmatprep.subr.mxu1 %v3713_v0 }
 0x1b9   :  { %2933 = vmatpush3.msra.mxu0 %v3782_v7  ;;  %2968 = vmatpush3.msra.mxu1 %v3782_v7 }
 0x1ba   :  { %2934 = vmatprep.subr.mxu0 %v3713_v0  ;;  %2969 = vmatprep.subr.mxu1 %v3713_v0 }
 0x1bb   :  { %2935 = vmatpush3.msra.mxu0 %v3799_v8  ;;  %2970 = vmatpush3.msra.mxu1 %v3799_v8 }
 0x1bc   :  { %2936 = vmatprep.subr.mxu0 %v3713_v0  ;;  %2971 = vmatprep.subr.mxu1 %v3713_v0 }
 0x1bd   :  { %2937 = vmatpush3.msra.mxu0 %v3808_v9  ;;  %2972 = vmatpush3.msra.mxu1 %v3808_v9 }
 0x1be   :  { %2938 = vmatprep.subr.mxu0 %v3713_v0  ;;  %2973 = vmatprep.subr.mxu1 %v3713_v0 }
 0x1bf   :  { %2939 = vmatpush3.msra.mxu0 %v3817_v10  ;;  %2974 = vmatpush3.msra.mxu1 %v3817_v10 }
 0x1c0   :  { %2940 = vmatprep.subr.mxu0 %v3713_v0  ;;  %2975 = vmatprep.subr.mxu1 %v3713_v0 }
 0x1c1   :  { %2941 = vmatpush3.msra.mxu0 %v3826_v11  ;;  %2976 = vmatpush3.msra.mxu1 %v3826_v11 }
 0x1c2   :  { %2942 = vmatprep.subr.mxu0 %v3713_v0  ;;  %2977 = vmatprep.subr.mxu1 %v3713_v0 }
 0x1c3   :  { %2943 = vmatpush3.msra.mxu0 %v3835_v12  ;;  %2978 = vmatpush3.msra.mxu1 %v3835_v12 }
 0x1c4   :  { %2944 = vmatprep.subr.mxu0 %v3713_v0  ;;  %2979 = vmatprep.subr.mxu1 %v3713_v0 }
 0x1c5   :  { %2945 = vmatpush3.msra.mxu0 %v3844_v13  ;;  %2980 = vmatpush3.msra.mxu1 %v3844_v13 }
 0x1c6   :  { %2946 = vmatprep.subr.mxu0 %v3713_v0  ;;  %2981 = vmatprep.subr.mxu1 %v3713_v0 }
 0x1c7   :  { %2947 = vmatpush3.msra.mxu0 %v3853_v14  ;;  %2982 = vmatpush3.msra.mxu1 %v3853_v14 }
 0x1c8   :  { %2948 = vmatprep.subr.mxu0 %v3713_v0  ;;  %2983 = vmatprep.subr.mxu1 %v3713_v0 }
 0x1c9   :  { %2949 = vmatpush3.msra.mxu0 %v3862_v15  ;;  %2984 = vmatpush3.msra.mxu1 %v3862_v15 }
 0x1ca   :  { %2950 = vmatprep.subr.mxu0 %v3713_v0  ;;  %2985 = vmatprep.subr.mxu1 %v3713_v0 }
 0x1cb   :  { %2951 = vmatpush3.msra.mxu0 %v3871_v16  ;;  %2986 = vmatpush3.msra.mxu1 %v3871_v16 }
 0x1cc   :  { %2952 = vmatprep.subr.mxu0 %v3713_v0  ;;  %2987 = vmatprep.subr.mxu1 %v3713_v0 }
 0x1cd   :  { %2953 = vmatpush3.msra.mxu0 %v3880_v17  ;;  %2988 = vmatpush3.msra.mxu1 %v3880_v17 }
 0x1ce   :  { %2954 = vmatprep.subr.mxu0 %v3713_v0  ;;  %2989 = vmatprep.subr.mxu1 %v3713_v0 }
 0x1cf   :  { %2955 = vmatpush3.msra.mxu0 %v3889_v18  ;;  %2956 = vmatprep.mubr.msk.f32.mxu0 %vm3714_vm0, %v3713_v0 }
 0x1d0   :  { %2990 = vmatpush3.msra.mxu1 %v3889_v18  ;;  %2991 = vmatprep.mubr.msk.f32.mxu1 %vm3714_vm0, %v3713_v0 }
 0x1d1   :  { %2994 = vmatprep.subr.mxu0 %v3713_v0  ;;  %3029 = vmatprep.subr.mxu1 %v3713_v0 }
 0x270   :  { %v414_v44 = vpop.f32.mrf.mxu0  ;;  %v490_v45 = vpop.f32.mrf.mxu1 }
 0x271   :  { %v415_v46 = vadd.f32 %v3976_v19, %v414_v44  ;;  %v491_v47 = vadd.f32 %v3976_v19, %v490_v45  ;;  %v4531_v44 = vld [vmem:[%s5061_s0 + $0x8] sm:$0xff]  ;;  %v4540_v45 = vld [vmem:[%s5061_s0] sm:$0xff] }
 0x272   :  { %v2888_v50 = vpop.f32.mrf.mxu0  ;;  %v2923_v51 = vpop.f32.mrf.mxu1 }
 0x273   :  { %v418_v52 = vmax.f32 %v415_v46, 0.0  ;;  %v494_v53 = vmax.f32 %v491_v47, 0.0 }
 0x275   :  { %v419_v54 = vadd.f32 %v2171_v48, %v418_v52  ;;  %v495_v55 = vadd.f32 %v2174_v49, %v494_v53 }
 0x277   :  { %2172 = vst [vmem:[%s5063_s3 + $0x30] sm:$0xff] %v419_v54  ;;  %2175 = vst [vmem:[%s5063_s3 + $0x38] sm:$0xff] %v495_v55  ;;  %2957 = vmatmul.mubr.f32.vlgmr.msra.gmra.mxu0 %v419_v54  ;;  %2992 = vmatmul.mubr.f32.vlgmr.msra.gmra.mxu1 %v495_v55 }
 0x278   :  { %2995 = vmatpush3.msra.mxu0 %v3740_v1  ;;  %3030 = vmatpush3.msra.mxu1 %v3740_v1 }
 0x279   :  { %2996 = vmatprep.subr.mxu0 %v3713_v0  ;;  %3031 = vmatprep.subr.mxu1 %v3713_v0 }
 0x27a   :  { %2997 = vmatpush3.msra.mxu0 %v3745_v2  ;;  %3032 = vmatpush3.msra.mxu1 %v3745_v2 }
 0x27b   :  { %2998 = vmatprep.subr.mxu0 %v3713_v0  ;;  %3033 = vmatprep.subr.mxu1 %v3713_v0 }
 0x27c   :  { %2999 = vmatpush3.msra.mxu0 %v3754_v3  ;;  %3034 = vmatpush3.msra.mxu1 %v3754_v3 }
 0x27d   :  { %3000 = vmatprep.subr.mxu0 %v3713_v0  ;;  %3035 = vmatprep.subr.mxu1 %v3713_v0 }
 0x27e   :  { %3001 = vmatpush3.msra.mxu0 %v3763_v4  ;;  %3036 = vmatpush3.msra.mxu1 %v3763_v4  ;;  %v2177_v60 = vld [vmem:[%s5062_s2 + $0x40] sm:$0xff]  ;;  %v2180_v61 = vld [vmem:[%s5062_s2 + $0x48] sm:$0xff]  ;;  %v2183_v26 = vld [vmem:[%s5062_s2 + $0x50] sm:$0xff] }
 0x27f   :  { %3002 = vmatprep.subr.mxu0 %v3713_v0  ;;  %3037 = vmatprep.subr.mxu1 %v3713_v0  ;;  %v2186_v27 = vld [vmem:[%s5062_s2 + $0x58] sm:$0xff]  ;;  %v2195_v50 = vld [vmem:[%s5062_s2 + $0x70] sm:$0xff] }
 0x280   :  { %3003 = vmatpush3.msra.mxu0 %v3782_v7  ;;  %3038 = vmatpush3.msra.mxu1 %v3782_v7  ;;  %v2198_v51 = vld [vmem:[%s5062_s2 + $0x78] sm:$0xff] }
 0x281   :  { %3004 = vmatprep.subr.mxu0 %v3713_v0  ;;  %3039 = vmatprep.subr.mxu1 %v3713_v0 }
 0x282   :  { %3005 = vmatpush3.msra.mxu0 %v3799_v8  ;;  %3040 = vmatpush3.msra.mxu1 %v3799_v8 }
 0x283   :  { %3006 = vmatprep.subr.mxu0 %v3713_v0  ;;  %3041 = vmatprep.subr.mxu1 %v3713_v0 }
 0x284   :  { %3007 = vmatpush3.msra.mxu0 %v3808_v9  ;;  %3042 = vmatpush3.msra.mxu1 %v3808_v9 }
 0x285   :  { %3008 = vmatprep.subr.mxu0 %v3713_v0  ;;  %3043 = vmatprep.subr.mxu1 %v3713_v0 }
 0x286   :  { %3009 = vmatpush3.msra.mxu0 %v3817_v10  ;;  %3044 = vmatpush3.msra.mxu1 %v3817_v10 }
 0x287   :  { %3010 = vmatprep.subr.mxu0 %v3713_v0  ;;  %3045 = vmatprep.subr.mxu1 %v3713_v0 }
 0x288   :  { %3011 = vmatpush3.msra.mxu0 %v3826_v11  ;;  %3046 = vmatpush3.msra.mxu1 %v3826_v11 }
 0x289   :  { %3012 = vmatprep.subr.mxu0 %v3713_v0  ;;  %3047 = vmatprep.subr.mxu1 %v3713_v0 }
 0x28a   :  { %3013 = vmatpush3.msra.mxu0 %v3835_v12  ;;  %3048 = vmatpush3.msra.mxu1 %v3835_v12 }
 0x28b   :  { %3014 = vmatprep.subr.mxu0 %v3713_v0  ;;  %3049 = vmatprep.subr.mxu1 %v3713_v0 }
 0x28c   :  { %3015 = vmatpush3.msra.mxu0 %v3844_v13  ;;  %3050 = vmatpush3.msra.mxu1 %v3844_v13 }
 0x28d   :  { %3016 = vmatprep.subr.mxu0 %v3713_v0  ;;  %3051 = vmatprep.subr.mxu1 %v3713_v0 }
 0x28e   :  { %3017 = vmatpush3.msra.mxu0 %v3853_v14  ;;  %3052 = vmatpush3.msra.mxu1 %v3853_v14 }
 0x28f   :  { %3018 = vmatprep.subr.mxu0 %v3713_v0  ;;  %3053 = vmatprep.subr.mxu1 %v3713_v0 }
 0x290   :  { %3019 = vmatpush3.msra.mxu0 %v3862_v15  ;;  %3054 = vmatpush3.msra.mxu1 %v3862_v15 }
 0x291   :  { %3020 = vmatprep.subr.mxu0 %v3713_v0  ;;  %3055 = vmatprep.subr.mxu1 %v3713_v0 }
 0x292   :  { %3021 = vmatpush3.msra.mxu0 %v3871_v16  ;;  %3056 = vmatpush3.msra.mxu1 %v3871_v16 }
 0x293   :  { %3022 = vmatprep.subr.mxu0 %v3713_v0  ;;  %3057 = vmatprep.subr.mxu1 %v3713_v0 }
 0x294   :  { %3023 = vmatpush3.msra.mxu0 %v3880_v17  ;;  %3058 = vmatpush3.msra.mxu1 %v3880_v17 }
 0x295   :  { %3024 = vmatprep.subr.mxu0 %v3713_v0  ;;  %3059 = vmatprep.subr.mxu1 %v3713_v0 }
 0x296   :  { %3025 = vmatpush3.msra.mxu0 %v3889_v18  ;;  %3026 = vmatprep.mubr.msk.f32.mxu0 %vm3714_vm0, %v3713_v0 }
 0x297   :  { %3060 = vmatpush3.msra.mxu1 %v3889_v18  ;;  %3061 = vmatprep.mubr.msk.f32.mxu1 %vm3714_vm0, %v3713_v0 }
 0x298   :  { %3064 = vmatprep.subr.mxu0 %v3713_v0  ;;  %3099 = vmatprep.subr.mxu1 %v3713_v0 }
 0x337   :  { %v566_v56 = vpop.f32.mrf.mxu0  ;;  %v642_v57 = vpop.f32.mrf.mxu1 }
 0x338   :  { %v567_v58 = vadd.f32 %v3976_v19, %v566_v56  ;;  %v643_v59 = vadd.f32 %v3976_v19, %v642_v57 }
 0x339   :  { %v2958_v62 = vpop.f32.mrf.mxu0  ;;  %v2993_v63 = vpop.f32.mrf.mxu1 }
 0x33a   :  { %v570_v5 = vmax.f32 %v567_v58, 0.0  ;;  %v646_v6 = vmax.f32 %v643_v59, 0.0  ;;  %v4635_v59 = vld [vmem:[%s5064_s1] ss:$0 sm:$0xff] }
 0x33c   :  { %v4232_v20 = vadd.f32 %v2177_v60, %v570_v5  ;;  %v4234_v21 = vadd.f32 %v2180_v61, %v646_v6 }
 0x33e   :  { %3027 = vmatmul.mubr.f32.vlgmr.msra.gmra.mxu0 %v4232_v20  ;;  %3062 = vmatmul.mubr.f32.vlgmr.msra.gmra.mxu1 %v4234_v21 }
 0x33f   :  { %3065 = vmatpush3.msra.mxu0 %v3740_v1  ;;  %3100 = vmatpush3.msra.mxu1 %v3740_v1 }
 0x340   :  { %3066 = vmatprep.subr.mxu0 %v3713_v0  ;;  %3101 = vmatprep.subr.mxu1 %v3713_v0 }
 0x341   :  { %3067 = vmatpush3.msra.mxu0 %v3745_v2  ;;  %3102 = vmatpush3.msra.mxu1 %v3745_v2 }
 0x342   :  { %3068 = vmatprep.subr.mxu0 %v3713_v0  ;;  %3103 = vmatprep.subr.mxu1 %v3713_v0 }
 0x343   :  { %3069 = vmatpush3.msra.mxu0 %v3754_v3  ;;  %3104 = vmatpush3.msra.mxu1 %v3754_v3 }
 0x344   :  { %3070 = vmatprep.subr.mxu0 %v3713_v0  ;;  %3105 = vmatprep.subr.mxu1 %v3713_v0 }
 0x345   :  { %3071 = vmatpush3.msra.mxu0 %v3763_v4  ;;  %3106 = vmatpush3.msra.mxu1 %v3763_v4 }
 0x346   :  { %3072 = vmatprep.subr.mxu0 %v3713_v0  ;;  %3107 = vmatprep.subr.mxu1 %v3713_v0 }
 0x347   :  { %3073 = vmatpush3.msra.mxu0 %v3782_v7  ;;  %3108 = vmatpush3.msra.mxu1 %v3782_v7 }
 0x348   :  { %3074 = vmatprep.subr.mxu0 %v3713_v0  ;;  %3109 = vmatprep.subr.mxu1 %v3713_v0 }
 0x349   :  { %3075 = vmatpush3.msra.mxu0 %v3799_v8  ;;  %3110 = vmatpush3.msra.mxu1 %v3799_v8 }
 0x34a   :  { %3076 = vmatprep.subr.mxu0 %v3713_v0  ;;  %3111 = vmatprep.subr.mxu1 %v3713_v0 }
 0x34b   :  { %3077 = vmatpush3.msra.mxu0 %v3808_v9  ;;  %3112 = vmatpush3.msra.mxu1 %v3808_v9 }
 0x34c   :  { %3078 = vmatprep.subr.mxu0 %v3713_v0  ;;  %3113 = vmatprep.subr.mxu1 %v3713_v0 }
 0x34d   :  { %3079 = vmatpush3.msra.mxu0 %v3817_v10  ;;  %3114 = vmatpush3.msra.mxu1 %v3817_v10 }
 0x34e   :  { %3080 = vmatprep.subr.mxu0 %v3713_v0  ;;  %3115 = vmatprep.subr.mxu1 %v3713_v0 }
 0x34f   :  { %3081 = vmatpush3.msra.mxu0 %v3826_v11  ;;  %3116 = vmatpush3.msra.mxu1 %v3826_v11 }
 0x350   :  { %3082 = vmatprep.subr.mxu0 %v3713_v0  ;;  %3117 = vmatprep.subr.mxu1 %v3713_v0 }
 0x351   :  { %3083 = vmatpush3.msra.mxu0 %v3835_v12  ;;  %3118 = vmatpush3.msra.mxu1 %v3835_v12 }
 0x352   :  { %3084 = vmatprep.subr.mxu0 %v3713_v0  ;;  %3119 = vmatprep.subr.mxu1 %v3713_v0 }
 0x353   :  { %3085 = vmatpush3.msra.mxu0 %v3844_v13  ;;  %3120 = vmatpush3.msra.mxu1 %v3844_v13 }
 0x354   :  { %3086 = vmatprep.subr.mxu0 %v3713_v0  ;;  %3121 = vmatprep.subr.mxu1 %v3713_v0 }
 0x355   :  { %3087 = vmatpush3.msra.mxu0 %v3853_v14  ;;  %3122 = vmatpush3.msra.mxu1 %v3853_v14 }
 0x356   :  { %3088 = vmatprep.subr.mxu0 %v3713_v0  ;;  %3123 = vmatprep.subr.mxu1 %v3713_v0 }
 0x357   :  { %3089 = vmatpush3.msra.mxu0 %v3862_v15  ;;  %3124 = vmatpush3.msra.mxu1 %v3862_v15 }
 0x358   :  { %3090 = vmatprep.subr.mxu0 %v3713_v0  ;;  %3125 = vmatprep.subr.mxu1 %v3713_v0 }
 0x359   :  { %3091 = vmatpush3.msra.mxu0 %v3871_v16  ;;  %3126 = vmatpush3.msra.mxu1 %v3871_v16 }
 0x35a   :  { %3092 = vmatprep.subr.mxu0 %v3713_v0  ;;  %3127 = vmatprep.subr.mxu1 %v3713_v0 }
 0x35b   :  { %3093 = vmatpush3.msra.mxu0 %v3880_v17  ;;  %3128 = vmatpush3.msra.mxu1 %v3880_v17 }
 0x35c   :  { %3094 = vmatprep.subr.mxu0 %v3713_v0  ;;  %3129 = vmatprep.subr.mxu1 %v3713_v0 }
 0x35d   :  { %3095 = vmatpush3.msra.mxu0 %v3889_v18  ;;  %3096 = vmatprep.mubr.msk.f32.mxu0 %vm3714_vm0, %v3713_v0 }
 0x35e   :  { %3130 = vmatpush3.msra.mxu1 %v3889_v18  ;;  %3131 = vmatprep.mubr.msk.f32.mxu1 %vm3714_vm0, %v3713_v0 }
 0x35f   :  { %3134 = vmatprep.subr.mxu0 %v3713_v0  ;;  %3169 = vmatprep.subr.mxu1 %v3713_v0 }
 0x3fe   :  { %v718_v22 = vpop.f32.mrf.mxu0  ;;  %v794_v23 = vpop.f32.mrf.mxu1 }
 0x3ff   :  { %v719_v24 = vadd.f32 %v3976_v19, %v718_v22  ;;  %v795_v25 = vadd.f32 %v3976_v19, %v794_v23 }
 0x400   :  { %v3028_v28 = vpop.f32.mrf.mxu0  ;;  %v3063_v29 = vpop.f32.mrf.mxu1 }
 0x401   :  { %v722_v30 = vmax.f32 %v719_v24, 0.0  ;;  %v798_v31 = vmax.f32 %v795_v25, 0.0 }
 0x403   :  { %v4314_v32 = vadd.f32 %v2183_v26, %v722_v30  ;;  %v4316_v33 = vadd.f32 %v2186_v27, %v798_v31 }
 0x405   :  { %3097 = vmatmul.mubr.f32.vlgmr.msra.gmra.mxu0 %v4314_v32  ;;  %3132 = vmatmul.mubr.f32.vlgmr.msra.gmra.mxu1 %v4316_v33 }
 0x406   :  { %3135 = vmatpush3.msra.mxu0 %v3740_v1  ;;  %3170 = vmatpush3.msra.mxu1 %v3740_v1 }
 0x407   :  { %3136 = vmatprep.subr.mxu0 %v3713_v0  ;;  %3171 = vmatprep.subr.mxu1 %v3713_v0 }
 0x408   :  { %3137 = vmatpush3.msra.mxu0 %v3745_v2  ;;  %3172 = vmatpush3.msra.mxu1 %v3745_v2 }
 0x409   :  { %3138 = vmatprep.subr.mxu0 %v3713_v0  ;;  %3173 = vmatprep.subr.mxu1 %v3713_v0 }
 0x40a   :  { %3139 = vmatpush3.msra.mxu0 %v3754_v3  ;;  %3174 = vmatpush3.msra.mxu1 %v3754_v3 }
 0x40b   :  { %3140 = vmatprep.subr.mxu0 %v3713_v0  ;;  %3175 = vmatprep.subr.mxu1 %v3713_v0 }
 0x40c   :  { %3141 = vmatpush3.msra.mxu0 %v3763_v4  ;;  %3176 = vmatpush3.msra.mxu1 %v3763_v4 }
 0x40d   :  { %3142 = vmatprep.subr.mxu0 %v3713_v0  ;;  %3177 = vmatprep.subr.mxu1 %v3713_v0 }
 0x40e   :  { %3143 = vmatpush3.msra.mxu0 %v3782_v7  ;;  %3178 = vmatpush3.msra.mxu1 %v3782_v7  ;;  %v2189_v7 = vld [vmem:[%s5062_s2 + $0x60] sm:$0xff] }
 0x40f   :  { %3144 = vmatprep.subr.mxu0 %v3713_v0  ;;  %3179 = vmatprep.subr.mxu1 %v3713_v0 }
 0x410   :  { %3145 = vmatpush3.msra.mxu0 %v3799_v8  ;;  %3180 = vmatpush3.msra.mxu1 %v3799_v8  ;;  %v2192_v8 = vld [vmem:[%s5062_s2 + $0x68] sm:$0xff] }
 0x411   :  { %3146 = vmatprep.subr.mxu0 %v3713_v0  ;;  %3181 = vmatprep.subr.mxu1 %v3713_v0 }
 0x412   :  { %3147 = vmatpush3.msra.mxu0 %v3808_v9  ;;  %3182 = vmatpush3.msra.mxu1 %v3808_v9 }
 0x413   :  { %3148 = vmatprep.subr.mxu0 %v3713_v0  ;;  %3183 = vmatprep.subr.mxu1 %v3713_v0 }
 0x414   :  { %3149 = vmatpush3.msra.mxu0 %v3817_v10  ;;  %3184 = vmatpush3.msra.mxu1 %v3817_v10 }
 0x415   :  { %3150 = vmatprep.subr.mxu0 %v3713_v0  ;;  %3185 = vmatprep.subr.mxu1 %v3713_v0 }
 0x416   :  { %3151 = vmatpush3.msra.mxu0 %v3826_v11  ;;  %3186 = vmatpush3.msra.mxu1 %v3826_v11 }
 0x417   :  { %3152 = vmatprep.subr.mxu0 %v3713_v0  ;;  %3187 = vmatprep.subr.mxu1 %v3713_v0 }
 0x418   :  { %3153 = vmatpush3.msra.mxu0 %v3835_v12  ;;  %3188 = vmatpush3.msra.mxu1 %v3835_v12 }
 0x419   :  { %3154 = vmatprep.subr.mxu0 %v3713_v0  ;;  %3189 = vmatprep.subr.mxu1 %v3713_v0 }
 0x41a   :  { %3155 = vmatpush3.msra.mxu0 %v3844_v13  ;;  %3190 = vmatpush3.msra.mxu1 %v3844_v13 }
 0x41b   :  { %3156 = vmatprep.subr.mxu0 %v3713_v0  ;;  %3191 = vmatprep.subr.mxu1 %v3713_v0 }
 0x41c   :  { %3157 = vmatpush3.msra.mxu0 %v3853_v14  ;;  %3192 = vmatpush3.msra.mxu1 %v3853_v14 }
 0x41d   :  { %3158 = vmatprep.subr.mxu0 %v3713_v0  ;;  %3193 = vmatprep.subr.mxu1 %v3713_v0 }
 0x41e   :  { %3159 = vmatpush3.msra.mxu0 %v3862_v15  ;;  %3194 = vmatpush3.msra.mxu1 %v3862_v15  ;;  %v4405_v15 = vld [vmem:[%s5061_s0 + $0x78] sm:$0xff] }
 0x41f   :  { %3160 = vmatprep.subr.mxu0 %v3713_v0  ;;  %3195 = vmatprep.subr.mxu1 %v3713_v0 }
 0x420   :  { %3161 = vmatpush3.msra.mxu0 %v3871_v16  ;;  %3196 = vmatpush3.msra.mxu1 %v3871_v16  ;;  %v4414_v16 = vld [vmem:[%s5061_s0 + $0x70] sm:$0xff] }
 0x421   :  { %3162 = vmatprep.subr.mxu0 %v3713_v0  ;;  %3197 = vmatprep.subr.mxu1 %v3713_v0 }
 0x422   :  { %3163 = vmatpush3.msra.mxu0 %v3880_v17  ;;  %3198 = vmatpush3.msra.mxu1 %v3880_v17  ;;  %v4423_v17 = vld [vmem:[%s5061_s0 + $0x68] sm:$0xff] }
 0x423   :  { %3164 = vmatprep.subr.mxu0 %v3713_v0  ;;  %3199 = vmatprep.subr.mxu1 %v3713_v0 }
 0x424   :  { %3165 = vmatpush3.msra.mxu0 %v3889_v18  ;;  %3166 = vmatprep.mubr.msk.f32.mxu0 %vm3714_vm0, %v3713_v0 }
 0x425   :  { %3200 = vmatpush3.msra.mxu1 %v3889_v18  ;;  %3201 = vmatprep.mubr.msk.f32.mxu1 %vm3714_vm0, %v3713_v0  ;;  %v4432_v18 = vld [vmem:[%s5061_s0 + $0x60] sm:$0xff] }
 0x426   :  { %3204 = vmatprep.subr.mxu0 %v3713_v0  ;;  %3239 = vmatprep.subr.mxu1 %v3713_v0 }
 0x4c5   :  { %v870_v1 = vpop.f32.mrf.mxu0  ;;  %v946_v2 = vpop.f32.mrf.mxu1 }
 0x4c6   :  { %v871_v3 = vadd.f32 %v3976_v19, %v870_v1  ;;  %v947_v4 = vadd.f32 %v3976_v19, %v946_v2 }
 0x4c7   :  { %v3098_v9 = vpop.f32.mrf.mxu0  ;;  %v3133_v10 = vpop.f32.mrf.mxu1 }
 0x4c8   :  { %v874_v11 = vmax.f32 %v871_v3, 0.0  ;;  %v950_v12 = vmax.f32 %v947_v4, 0.0 }
 0x4ca   :  { %v4396_v13 = vadd.f32 %v2189_v7, %v874_v11  ;;  %v4398_v14 = vadd.f32 %v2192_v8, %v950_v12 }
 0x4cc   :  { %3167 = vmatmul.mubr.f32.vlgmr.msra.gmra.mxu0 %v4396_v13  ;;  %3202 = vmatmul.mubr.f32.vlgmr.msra.gmra.mxu1 %v4398_v14 }
 0x4cd   :  { %3205 = vmatpush3.msra.mxu0 %v4405_v15  ;;  %3240 = vmatpush3.msra.mxu1 %v4405_v15 }
 0x4ce   :  { %3206 = vmatprep.subr.mxu0 %v3713_v0  ;;  %3241 = vmatprep.subr.mxu1 %v3713_v0 }
 0x4cf   :  { %3207 = vmatpush3.msra.mxu0 %v4414_v16  ;;  %3242 = vmatpush3.msra.mxu1 %v4414_v16 }
 0x4d0   :  { %3208 = vmatprep.subr.mxu0 %v3713_v0  ;;  %3243 = vmatprep.subr.mxu1 %v3713_v0 }
 0x4d1   :  { %3209 = vmatpush3.msra.mxu0 %v4423_v17  ;;  %3244 = vmatpush3.msra.mxu1 %v4423_v17 }
 0x4d2   :  { %3210 = vmatprep.subr.mxu0 %v3713_v0  ;;  %3245 = vmatprep.subr.mxu1 %v3713_v0 }
 0x4d3   :  { %3211 = vmatpush3.msra.mxu0 %v4432_v18  ;;  %3246 = vmatpush3.msra.mxu1 %v4432_v18 }
 0x4d4   :  { %3212 = vmatprep.subr.mxu0 %v3713_v0  ;;  %3247 = vmatprep.subr.mxu1 %v3713_v0 }
 0x4d5   :  { %3213 = vmatpush3.msra.mxu0 %v4441_v34  ;;  %3248 = vmatpush3.msra.mxu1 %v4441_v34 }
 0x4d6   :  { %3214 = vmatprep.subr.mxu0 %v3713_v0  ;;  %3249 = vmatprep.subr.mxu1 %v3713_v0 }
 0x4d7   :  { %3215 = vmatpush3.msra.mxu0 %v4450_v35  ;;  %3250 = vmatpush3.msra.mxu1 %v4450_v35 }
 0x4d8   :  { %3216 = vmatprep.subr.mxu0 %v3713_v0  ;;  %3251 = vmatprep.subr.mxu1 %v3713_v0 }
 0x4d9   :  { %3217 = vmatpush3.msra.mxu0 %v4459_v36  ;;  %3252 = vmatpush3.msra.mxu1 %v4459_v36 }
 0x4da   :  { %3218 = vmatprep.subr.mxu0 %v3713_v0  ;;  %3253 = vmatprep.subr.mxu1 %v3713_v0 }
 0x4db   :  { %3219 = vmatpush3.msra.mxu0 %v4468_v37  ;;  %3254 = vmatpush3.msra.mxu1 %v4468_v37 }
 0x4dc   :  { %3220 = vmatprep.subr.mxu0 %v3713_v0  ;;  %3255 = vmatprep.subr.mxu1 %v3713_v0 }
 0x4dd   :  { %3221 = vmatpush3.msra.mxu0 %v4477_v38  ;;  %3256 = vmatpush3.msra.mxu1 %v4477_v38 }
 0x4de   :  { %3222 = vmatprep.subr.mxu0 %v3713_v0  ;;  %3257 = vmatprep.subr.mxu1 %v3713_v0 }
 0x4df   :  { %3223 = vmatpush3.msra.mxu0 %v4486_v39  ;;  %3258 = vmatpush3.msra.mxu1 %v4486_v39 }
 0x4e0   :  { %3224 = vmatprep.subr.mxu0 %v3713_v0  ;;  %3259 = vmatprep.subr.mxu1 %v3713_v0 }
 0x4e1   :  { %3225 = vmatpush3.msra.mxu0 %v4495_v40  ;;  %3260 = vmatpush3.msra.mxu1 %v4495_v40 }
 0x4e2   :  { %3226 = vmatprep.subr.mxu0 %v3713_v0  ;;  %3261 = vmatprep.subr.mxu1 %v3713_v0 }
 0x4e3   :  { %3227 = vmatpush3.msra.mxu0 %v4504_v41  ;;  %3262 = vmatpush3.msra.mxu1 %v4504_v41 }
 0x4e4   :  { %3228 = vmatprep.subr.mxu0 %v3713_v0  ;;  %3263 = vmatprep.subr.mxu1 %v3713_v0 }
 0x4e5   :  { %3229 = vmatpush3.msra.mxu0 %v4513_v42  ;;  %3264 = vmatpush3.msra.mxu1 %v4513_v42 }
 0x4e6   :  { %3230 = vmatprep.subr.mxu0 %v3713_v0  ;;  %3265 = vmatprep.subr.mxu1 %v3713_v0 }
 0x4e7   :  { %3231 = vmatpush3.msra.mxu0 %v4522_v43  ;;  %3266 = vmatpush3.msra.mxu1 %v4522_v43 }
 0x4e8   :  { %3232 = vmatprep.subr.mxu0 %v3713_v0  ;;  %3267 = vmatprep.subr.mxu1 %v3713_v0 }
 0x4e9   :  { %3233 = vmatpush3.msra.mxu0 %v4531_v44  ;;  %3268 = vmatpush3.msra.mxu1 %v4531_v44 }
 0x4ea   :  { %3234 = vmatprep.subr.mxu0 %v3713_v0  ;;  %3269 = vmatprep.subr.mxu1 %v3713_v0 }
 0x4eb   :  { %3235 = vmatpush3.msra.mxu0 %v4540_v45  ;;  %3236 = vmatprep.mubr.msk.f32.mxu0 %vm3714_vm0, %v3713_v0 }
 0x4ec   :  { %3270 = vmatpush3.msra.mxu1 %v4540_v45  ;;  %3271 = vmatprep.mubr.msk.f32.mxu1 %vm3714_vm0, %v3713_v0 }
 0x4ed   :  { %3274 = vmatprep.subr.mxu0 %v3713_v0  ;;  %3309 = vmatprep.subr.mxu1 %v3713_v0 }
 0x58c   :  { %v1022_v46 = vpop.f32.mrf.mxu0  ;;  %v1098_v47 = vpop.f32.mrf.mxu1 }
 0x58d   :  { %v1023_v48 = vadd.f32 %v3976_v19, %v1022_v46  ;;  %v1099_v49 = vadd.f32 %v3976_v19, %v1098_v47 }
 0x58e   :  { %v3168_v52 = vpop.f32.mrf.mxu0  ;;  %v3203_v53 = vpop.f32.mrf.mxu1 }
 0x58f   :  { %v1026_v54 = vmax.f32 %v1023_v48, 0.0  ;;  %v1102_v55 = vmax.f32 %v1099_v49, 0.0 }
 0x591   :  { %v1027_v56 = vadd.f32 %v2195_v50, %v1026_v54  ;;  %v1103_v57 = vadd.f32 %v2198_v51, %v1102_v55  ;;  %v2219_v50 = vld [vmem:[%s5063_s3 + $0x30] sm:$0xff]  ;;  %v2222_v51 = vld [vmem:[%s5063_s3 + $0x38] sm:$0xff] }
 0x593   :  { %2196 = vst [vmem:[%s5063_s3 + $0x70] sm:$0xff] %v1027_v56  ;;  %2199 = vst [vmem:[%s5063_s3 + $0x78] sm:$0xff] %v1103_v57  ;;  %3237 = vmatmul.mubr.f32.vlgmr.msra.gmra.mxu0 %v1027_v56  ;;  %3272 = vmatmul.mubr.f32.vlgmr.msra.gmra.mxu1 %v1103_v57 }
 0x594   :  { %3275 = vmatpush3.msra.mxu0 %v4405_v15  ;;  %3310 = vmatpush3.msra.mxu1 %v4405_v15 }
 0x595   :  { %3276 = vmatprep.subr.mxu0 %v3713_v0  ;;  %3311 = vmatprep.subr.mxu1 %v3713_v0 }
 0x596   :  { %3277 = vmatpush3.msra.mxu0 %v4414_v16  ;;  %3312 = vmatpush3.msra.mxu1 %v4414_v16 }
 0x597   :  { %3278 = vmatprep.subr.mxu0 %v3713_v0  ;;  %3313 = vmatprep.subr.mxu1 %v3713_v0 }
 0x598   :  { %3279 = vmatpush3.msra.mxu0 %v4423_v17  ;;  %3314 = vmatpush3.msra.mxu1 %v4423_v17 }
 0x599   :  { %3280 = vmatprep.subr.mxu0 %v3713_v0  ;;  %3315 = vmatprep.subr.mxu1 %v3713_v0 }
 0x59a   :  { %3281 = vmatpush3.msra.mxu0 %v4432_v18  ;;  %3316 = vmatpush3.msra.mxu1 %v4432_v18 }
 0x59b   :  { %3282 = vmatprep.subr.mxu0 %v3713_v0  ;;  %3317 = vmatprep.subr.mxu1 %v3713_v0 }
 0x59c   :  { %3283 = vmatpush3.msra.mxu0 %v4441_v34  ;;  %3318 = vmatpush3.msra.mxu1 %v4441_v34 }
 0x59d   :  { %3284 = vmatprep.subr.mxu0 %v3713_v0  ;;  %3319 = vmatprep.subr.mxu1 %v3713_v0 }
 0x59e   :  { %3285 = vmatpush3.msra.mxu0 %v4450_v35  ;;  %3320 = vmatpush3.msra.mxu1 %v4450_v35 }
 0x59f   :  { %3286 = vmatprep.subr.mxu0 %v3713_v0  ;;  %3321 = vmatprep.subr.mxu1 %v3713_v0 }
 0x5a0   :  { %3287 = vmatpush3.msra.mxu0 %v4459_v36  ;;  %3322 = vmatpush3.msra.mxu1 %v4459_v36 }
 0x5a1   :  { %3288 = vmatprep.subr.mxu0 %v3713_v0  ;;  %3323 = vmatprep.subr.mxu1 %v3713_v0 }
 0x5a2   :  { %3289 = vmatpush3.msra.mxu0 %v4468_v37  ;;  %3324 = vmatpush3.msra.mxu1 %v4468_v37 }
 0x5a3   :  { %3290 = vmatprep.subr.mxu0 %v3713_v0  ;;  %3325 = vmatprep.subr.mxu1 %v3713_v0 }
 0x5a4   :  { %3291 = vmatpush3.msra.mxu0 %v4477_v38  ;;  %3326 = vmatpush3.msra.mxu1 %v4477_v38 }
 0x5a5   :  { %3292 = vmatprep.subr.mxu0 %v3713_v0  ;;  %3327 = vmatprep.subr.mxu1 %v3713_v0 }
 0x5a6   :  { %3293 = vmatpush3.msra.mxu0 %v4486_v39  ;;  %3328 = vmatpush3.msra.mxu1 %v4486_v39 }
 0x5a7   :  { %3294 = vmatprep.subr.mxu0 %v3713_v0  ;;  %3329 = vmatprep.subr.mxu1 %v3713_v0 }
 0x5a8   :  { %3295 = vmatpush3.msra.mxu0 %v4495_v40  ;;  %3330 = vmatpush3.msra.mxu1 %v4495_v40 }
 0x5a9   :  { %3296 = vmatprep.subr.mxu0 %v3713_v0  ;;  %3331 = vmatprep.subr.mxu1 %v3713_v0 }
 0x5aa   :  { %3297 = vmatpush3.msra.mxu0 %v4504_v41  ;;  %3332 = vmatpush3.msra.mxu1 %v4504_v41 }
 0x5ab   :  { %3298 = vmatprep.subr.mxu0 %v3713_v0  ;;  %3333 = vmatprep.subr.mxu1 %v3713_v0 }
 0x5ac   :  { %3299 = vmatpush3.msra.mxu0 %v4513_v42  ;;  %3334 = vmatpush3.msra.mxu1 %v4513_v42 }
 0x5ad   :  { %3300 = vmatprep.subr.mxu0 %v3713_v0  ;;  %3335 = vmatprep.subr.mxu1 %v3713_v0 }
 0x5ae   :  { %3301 = vmatpush3.msra.mxu0 %v4522_v43  ;;  %3336 = vmatpush3.msra.mxu1 %v4522_v43 }
 0x5af   :  { %3302 = vmatprep.subr.mxu0 %v3713_v0  ;;  %3337 = vmatprep.subr.mxu1 %v3713_v0 }
 0x5b0   :  { %3303 = vmatpush3.msra.mxu0 %v4531_v44  ;;  %3338 = vmatpush3.msra.mxu1 %v4531_v44 }
 0x5b1   :  { %3304 = vmatprep.subr.mxu0 %v3713_v0  ;;  %3339 = vmatprep.subr.mxu1 %v3713_v0 }
 0x5b2   :  { %3305 = vmatpush3.msra.mxu0 %v4540_v45  ;;  %3306 = vmatprep.mubr.msk.f32.mxu0 %vm3714_vm0, %v3713_v0 }
 0x5b3   :  { %3340 = vmatpush3.msra.mxu1 %v4540_v45  ;;  %3341 = vmatprep.mubr.msk.f32.mxu1 %vm3714_vm0, %v3713_v0 }
 0x5b4   :  { %3344 = vmatprep.subr.mxu0 %v3713_v0  ;;  %3379 = vmatprep.subr.mxu1 %v3713_v0 }
 0x653   :  { %v1173_v19 = vpop.f32.mrf.mxu0  ;;  %v1248_v58 = vpop.f32.mrf.mxu1 }
 0x654   :  { %v1174_v60 = vadd.f32 %v4635_v59, %v1173_v19  ;;  %v1249_v61 = vadd.f32 %v4635_v59, %v1248_v58 }
 0x655   :  { %v3238_v62 = vpop.f32.mrf.mxu0  ;;  %v3273_v63 = vpop.f32.mrf.mxu1 }
 0x656   :  { %v1177_v5 = vmax.f32 %v1174_v60, 0.0  ;;  %v1252_v6 = vmax.f32 %v1249_v61, 0.0  ;;  %v2225_v62 = vld [vmem:[%s5063_s3 + $0x20] sm:$0xff]  ;;  %v2228_v63 = vld [vmem:[%s5063_s3 + $0x28] sm:$0xff] }
 0x658   :  { %v1178_v22 = vadd.f32 %v1177_v5, %v4396_v13  ;;  %v1253_v23 = vadd.f32 %v1252_v6, %v4398_v14 }
 0x65a   :  { %2202 = vst [vmem:[%s5063_s3 + $0x60] sm:$0xff] %v1178_v22  ;;  %2205 = vst [vmem:[%s5063_s3 + $0x68] sm:$0xff] %v1253_v23  ;;  %3307 = vmatmul.mubr.f32.vlgmr.msra.gmra.mxu0 %v1178_v22  ;;  %3342 = vmatmul.mubr.f32.vlgmr.msra.gmra.mxu1 %v1253_v23  ;;  %v2081_v22 = vld [vmem:[%s5063_s3 + $0x8] sm:$0xff] }
 0x65b   :  { %3345 = vmatpush3.msra.mxu0 %v4405_v15  ;;  %3380 = vmatpush3.msra.mxu1 %v4405_v15 }
 0x65c   :  { %3346 = vmatprep.subr.mxu0 %v3713_v0  ;;  %3381 = vmatprep.subr.mxu1 %v3713_v0 }
 0x65d   :  { %3347 = vmatpush3.msra.mxu0 %v4414_v16  ;;  %3382 = vmatpush3.msra.mxu1 %v4414_v16 }
 0x65e   :  { %3348 = vmatprep.subr.mxu0 %v3713_v0  ;;  %3383 = vmatprep.subr.mxu1 %v3713_v0 }
 0x65f   :  { %3349 = vmatpush3.msra.mxu0 %v4423_v17  ;;  %3384 = vmatpush3.msra.mxu1 %v4423_v17 }
 0x660   :  { %3350 = vmatprep.subr.mxu0 %v3713_v0  ;;  %3385 = vmatprep.subr.mxu1 %v3713_v0 }
 0x661   :  { %3351 = vmatpush3.msra.mxu0 %v4432_v18  ;;  %3386 = vmatpush3.msra.mxu1 %v4432_v18 }
 0x662   :  { %3352 = vmatprep.subr.mxu0 %v3713_v0  ;;  %3387 = vmatprep.subr.mxu1 %v3713_v0 }
 0x663   :  { %3353 = vmatpush3.msra.mxu0 %v4441_v34  ;;  %3388 = vmatpush3.msra.mxu1 %v4441_v34 }
 0x664   :  { %3354 = vmatprep.subr.mxu0 %v3713_v0  ;;  %3389 = vmatprep.subr.mxu1 %v3713_v0 }
 0x665   :  { %3355 = vmatpush3.msra.mxu0 %v4450_v35  ;;  %3390 = vmatpush3.msra.mxu1 %v4450_v35 }
 0x666   :  { %3356 = vmatprep.subr.mxu0 %v3713_v0  ;;  %3391 = vmatprep.subr.mxu1 %v3713_v0 }
 0x667   :  { %3357 = vmatpush3.msra.mxu0 %v4459_v36  ;;  %3392 = vmatpush3.msra.mxu1 %v4459_v36 }
 0x668   :  { %3358 = vmatprep.subr.mxu0 %v3713_v0  ;;  %3393 = vmatprep.subr.mxu1 %v3713_v0 }
 0x669   :  { %3359 = vmatpush3.msra.mxu0 %v4468_v37  ;;  %3394 = vmatpush3.msra.mxu1 %v4468_v37 }
 0x66a   :  { %3360 = vmatprep.subr.mxu0 %v3713_v0  ;;  %3395 = vmatprep.subr.mxu1 %v3713_v0 }
 0x66b   :  { %3361 = vmatpush3.msra.mxu0 %v4477_v38  ;;  %3396 = vmatpush3.msra.mxu1 %v4477_v38 }
 0x66c   :  { %3362 = vmatprep.subr.mxu0 %v3713_v0  ;;  %3397 = vmatprep.subr.mxu1 %v3713_v0 }
 0x66d   :  { %3363 = vmatpush3.msra.mxu0 %v4486_v39  ;;  %3398 = vmatpush3.msra.mxu1 %v4486_v39 }
 0x66e   :  { %3364 = vmatprep.subr.mxu0 %v3713_v0  ;;  %3399 = vmatprep.subr.mxu1 %v3713_v0 }
 0x66f   :  { %3365 = vmatpush3.msra.mxu0 %v4495_v40  ;;  %3400 = vmatpush3.msra.mxu1 %v4495_v40 }
 0x670   :  { %3366 = vmatprep.subr.mxu0 %v3713_v0  ;;  %3401 = vmatprep.subr.mxu1 %v3713_v0 }
 0x671   :  { %3367 = vmatpush3.msra.mxu0 %v4504_v41  ;;  %3402 = vmatpush3.msra.mxu1 %v4504_v41 }
 0x672   :  { %3368 = vmatprep.subr.mxu0 %v3713_v0  ;;  %3403 = vmatprep.subr.mxu1 %v3713_v0 }
 0x673   :  { %3369 = vmatpush3.msra.mxu0 %v4513_v42  ;;  %3404 = vmatpush3.msra.mxu1 %v4513_v42 }
 0x674   :  { %3370 = vmatprep.subr.mxu0 %v3713_v0  ;;  %3405 = vmatprep.subr.mxu1 %v3713_v0 }
 0x675   :  { %3371 = vmatpush3.msra.mxu0 %v4522_v43  ;;  %3406 = vmatpush3.msra.mxu1 %v4522_v43 }
 0x676   :  { %3372 = vmatprep.subr.mxu0 %v3713_v0  ;;  %3407 = vmatprep.subr.mxu1 %v3713_v0 }
 0x677   :  { %3373 = vmatpush3.msra.mxu0 %v4531_v44  ;;  %3408 = vmatpush3.msra.mxu1 %v4531_v44 }
 0x678   :  { %3374 = vmatprep.subr.mxu0 %v3713_v0  ;;  %3409 = vmatprep.subr.mxu1 %v3713_v0 }
 0x679   :  { %3375 = vmatpush3.msra.mxu0 %v4540_v45  ;;  %3376 = vmatprep.mubr.msk.f32.mxu0 %vm3714_vm0, %v3713_v0 }
 0x67a   :  { %3410 = vmatpush3.msra.mxu1 %v4540_v45  ;;  %3411 = vmatprep.mubr.msk.f32.mxu1 %vm3714_vm0, %v3713_v0 }
 0x67b   :  { %3414 = vmatprep.subr.mxu0 %v3713_v0  ;;  %3449 = vmatprep.subr.mxu1 %v3713_v0 }
 0x71a   :  { %v1323_v24 = vpop.f32.mrf.mxu0  ;;  %v1398_v25 = vpop.f32.mrf.mxu1 }
 0x71b   :  { %v1324_v26 = vadd.f32 %v4635_v59, %v1323_v24  ;;  %v1399_v27 = vadd.f32 %v4635_v59, %v1398_v25 }
 0x71c   :  { %v3308_v28 = vpop.f32.mrf.mxu0  ;;  %v3343_v29 = vpop.f32.mrf.mxu1 }
 0x71d   :  { %v1327_v30 = vmax.f32 %v1324_v26, 0.0  ;;  %v1402_v31 = vmax.f32 %v1399_v27, 0.0 }
 0x71f   :  { %v1328_v1 = vadd.f32 %v1327_v30, %v4314_v32  ;;  %v1403_v2 = vadd.f32 %v1402_v31, %v4316_v33 }
 0x721   :  { %2208 = vst [vmem:[%s5063_s3 + $0x50] sm:$0xff] %v1328_v1  ;;  %2211 = vst [vmem:[%s5063_s3 + $0x58] sm:$0xff] %v1403_v2  ;;  %3377 = vmatmul.mubr.f32.vlgmr.msra.gmra.mxu0 %v1328_v1  ;;  %3412 = vmatmul.mubr.f32.vlgmr.msra.gmra.mxu1 %v1403_v2 }
 0x722   :  { %3415 = vmatpush3.msra.mxu0 %v4405_v15  ;;  %3450 = vmatpush3.msra.mxu1 %v4405_v15 }
 0x723   :  { %3416 = vmatprep.subr.mxu0 %v3713_v0  ;;  %3451 = vmatprep.subr.mxu1 %v3713_v0 }
 0x724   :  { %3417 = vmatpush3.msra.mxu0 %v4414_v16  ;;  %3452 = vmatpush3.msra.mxu1 %v4414_v16 }
 0x725   :  { %3418 = vmatprep.subr.mxu0 %v3713_v0  ;;  %3453 = vmatprep.subr.mxu1 %v3713_v0 }
 0x726   :  { %3419 = vmatpush3.msra.mxu0 %v4423_v17  ;;  %3454 = vmatpush3.msra.mxu1 %v4423_v17 }
 0x727   :  { %3420 = vmatprep.subr.mxu0 %v3713_v0  ;;  %3455 = vmatprep.subr.mxu1 %v3713_v0 }
 0x728   :  { %3421 = vmatpush3.msra.mxu0 %v4432_v18  ;;  %3456 = vmatpush3.msra.mxu1 %v4432_v18 }
 0x729   :  { %3422 = vmatprep.subr.mxu0 %v3713_v0  ;;  %3457 = vmatprep.subr.mxu1 %v3713_v0 }
 0x72a   :  { %3423 = vmatpush3.msra.mxu0 %v4441_v34  ;;  %3458 = vmatpush3.msra.mxu1 %v4441_v34 }
 0x72b   :  { %3424 = vmatprep.subr.mxu0 %v3713_v0  ;;  %3459 = vmatprep.subr.mxu1 %v3713_v0 }
 0x72c   :  { %3425 = vmatpush3.msra.mxu0 %v4450_v35  ;;  %3460 = vmatpush3.msra.mxu1 %v4450_v35 }
 0x72d   :  { %3426 = vmatprep.subr.mxu0 %v3713_v0  ;;  %3461 = vmatprep.subr.mxu1 %v3713_v0 }
 0x72e   :  { %3427 = vmatpush3.msra.mxu0 %v4459_v36  ;;  %3462 = vmatpush3.msra.mxu1 %v4459_v36 }
 0x72f   :  { %3428 = vmatprep.subr.mxu0 %v3713_v0  ;;  %3463 = vmatprep.subr.mxu1 %v3713_v0 }
 0x730   :  { %3429 = vmatpush3.msra.mxu0 %v4468_v37  ;;  %3464 = vmatpush3.msra.mxu1 %v4468_v37 }
 0x731   :  { %3430 = vmatprep.subr.mxu0 %v3713_v0  ;;  %3465 = vmatprep.subr.mxu1 %v3713_v0 }
 0x732   :  { %3431 = vmatpush3.msra.mxu0 %v4477_v38  ;;  %3466 = vmatpush3.msra.mxu1 %v4477_v38 }
 0x733   :  { %3432 = vmatprep.subr.mxu0 %v3713_v0  ;;  %3467 = vmatprep.subr.mxu1 %v3713_v0 }
 0x734   :  { %3433 = vmatpush3.msra.mxu0 %v4486_v39  ;;  %3468 = vmatpush3.msra.mxu1 %v4486_v39 }
 0x735   :  { %3434 = vmatprep.subr.mxu0 %v3713_v0  ;;  %3469 = vmatprep.subr.mxu1 %v3713_v0 }
 0x736   :  { %3435 = vmatpush3.msra.mxu0 %v4495_v40  ;;  %3470 = vmatpush3.msra.mxu1 %v4495_v40 }
 0x737   :  { %3436 = vmatprep.subr.mxu0 %v3713_v0  ;;  %3471 = vmatprep.subr.mxu1 %v3713_v0 }
 0x738   :  { %3437 = vmatpush3.msra.mxu0 %v4504_v41  ;;  %3472 = vmatpush3.msra.mxu1 %v4504_v41 }
 0x739   :  { %3438 = vmatprep.subr.mxu0 %v3713_v0  ;;  %3473 = vmatprep.subr.mxu1 %v3713_v0 }
 0x73a   :  { %3439 = vmatpush3.msra.mxu0 %v4513_v42  ;;  %3474 = vmatpush3.msra.mxu1 %v4513_v42 }
 0x73b   :  { %3440 = vmatprep.subr.mxu0 %v3713_v0  ;;  %3475 = vmatprep.subr.mxu1 %v3713_v0 }
 0x73c   :  { %3441 = vmatpush3.msra.mxu0 %v4522_v43  ;;  %3476 = vmatpush3.msra.mxu1 %v4522_v43 }
 0x73d   :  { %3442 = vmatprep.subr.mxu0 %v3713_v0  ;;  %3477 = vmatprep.subr.mxu1 %v3713_v0 }
 0x73e   :  { %3443 = vmatpush3.msra.mxu0 %v4531_v44  ;;  %3478 = vmatpush3.msra.mxu1 %v4531_v44 }
 0x73f   :  { %3444 = vmatprep.subr.mxu0 %v3713_v0  ;;  %3479 = vmatprep.subr.mxu1 %v3713_v0 }
 0x740   :  { %3445 = vmatpush3.msra.mxu0 %v4540_v45  ;;  %3446 = vmatprep.mubr.msk.f32.mxu0 %vm3714_vm0, %v3713_v0 }
 0x741   :  { %3480 = vmatpush3.msra.mxu1 %v4540_v45  ;;  %3481 = vmatprep.mubr.msk.f32.mxu1 %vm3714_vm0, %v3713_v0 }
 0x742   :  { %3484 = vmatprep.subr.mxu0 %v3713_v0  ;;  %3519 = vmatprep.subr.mxu1 %v3713_v0 }
 0x7e1   :  { %v1473_v32 = vpop.f32.mrf.mxu0  ;;  %v1548_v33 = vpop.f32.mrf.mxu1 }
 0x7e2   :  { %v1474_v3 = vadd.f32 %v4635_v59, %v1473_v32  ;;  %v1549_v4 = vadd.f32 %v4635_v59, %v1548_v33 }
 0x7e3   :  { %v3378_v7 = vpop.f32.mrf.mxu0  ;;  %v3413_v8 = vpop.f32.mrf.mxu1 }
 0x7e4   :  { %v1477_v9 = vmax.f32 %v1474_v3, 0.0  ;;  %v1552_v10 = vmax.f32 %v1549_v4, 0.0 }
 0x7e6   :  { %v1478_v11 = vadd.f32 %v1477_v9, %v4232_v20  ;;  %v1553_v12 = vadd.f32 %v1552_v10, %v4234_v21 }
 0x7e8   :  { %2214 = vst [vmem:[%s5063_s3 + $0x40] sm:$0xff] %v1478_v11  ;;  %2217 = vst [vmem:[%s5063_s3 + $0x48] sm:$0xff] %v1553_v12  ;;  %3447 = vmatmul.mubr.f32.vlgmr.msra.gmra.mxu0 %v1478_v11  ;;  %3482 = vmatmul.mubr.f32.vlgmr.msra.gmra.mxu1 %v1553_v12 }
 0x7e9   :  { %3485 = vmatpush3.msra.mxu0 %v4405_v15  ;;  %3520 = vmatpush3.msra.mxu1 %v4405_v15 }
 0x7ea   :  { %3486 = vmatprep.subr.mxu0 %v3713_v0  ;;  %3521 = vmatprep.subr.mxu1 %v3713_v0 }
 0x7eb   :  { %3487 = vmatpush3.msra.mxu0 %v4414_v16  ;;  %3522 = vmatpush3.msra.mxu1 %v4414_v16 }
 0x7ec   :  { %3488 = vmatprep.subr.mxu0 %v3713_v0  ;;  %3523 = vmatprep.subr.mxu1 %v3713_v0 }
 0x7ed   :  { %3489 = vmatpush3.msra.mxu0 %v4423_v17  ;;  %3524 = vmatpush3.msra.mxu1 %v4423_v17 }
 0x7ee   :  { %3490 = vmatprep.subr.mxu0 %v3713_v0  ;;  %3525 = vmatprep.subr.mxu1 %v3713_v0 }
 0x7ef   :  { %3491 = vmatpush3.msra.mxu0 %v4432_v18  ;;  %3526 = vmatpush3.msra.mxu1 %v4432_v18 }
 0x7f0   :  { %3492 = vmatprep.subr.mxu0 %v3713_v0  ;;  %3527 = vmatprep.subr.mxu1 %v3713_v0 }
 0x7f1   :  { %3493 = vmatpush3.msra.mxu0 %v4441_v34  ;;  %3528 = vmatpush3.msra.mxu1 %v4441_v34 }
 0x7f2   :  { %3494 = vmatprep.subr.mxu0 %v3713_v0  ;;  %3529 = vmatprep.subr.mxu1 %v3713_v0 }
 0x7f3   :  { %3495 = vmatpush3.msra.mxu0 %v4450_v35  ;;  %3530 = vmatpush3.msra.mxu1 %v4450_v35 }
 0x7f4   :  { %3496 = vmatprep.subr.mxu0 %v3713_v0  ;;  %3531 = vmatprep.subr.mxu1 %v3713_v0 }
 0x7f5   :  { %3497 = vmatpush3.msra.mxu0 %v4459_v36  ;;  %3532 = vmatpush3.msra.mxu1 %v4459_v36 }
 0x7f6   :  { %3498 = vmatprep.subr.mxu0 %v3713_v0  ;;  %3533 = vmatprep.subr.mxu1 %v3713_v0 }
 0x7f7   :  { %3499 = vmatpush3.msra.mxu0 %v4468_v37  ;;  %3534 = vmatpush3.msra.mxu1 %v4468_v37 }
 0x7f8   :  { %3500 = vmatprep.subr.mxu0 %v3713_v0  ;;  %3535 = vmatprep.subr.mxu1 %v3713_v0 }
 0x7f9   :  { %3501 = vmatpush3.msra.mxu0 %v4477_v38  ;;  %3536 = vmatpush3.msra.mxu1 %v4477_v38 }
 0x7fa   :  { %3502 = vmatprep.subr.mxu0 %v3713_v0  ;;  %3537 = vmatprep.subr.mxu1 %v3713_v0 }
 0x7fb   :  { %3503 = vmatpush3.msra.mxu0 %v4486_v39  ;;  %3538 = vmatpush3.msra.mxu1 %v4486_v39 }
 0x7fc   :  { %3504 = vmatprep.subr.mxu0 %v3713_v0  ;;  %3539 = vmatprep.subr.mxu1 %v3713_v0 }
 0x7fd   :  { %3505 = vmatpush3.msra.mxu0 %v4495_v40  ;;  %3540 = vmatpush3.msra.mxu1 %v4495_v40 }
 0x7fe   :  { %3506 = vmatprep.subr.mxu0 %v3713_v0  ;;  %3541 = vmatprep.subr.mxu1 %v3713_v0 }
 0x7ff   :  { %3507 = vmatpush3.msra.mxu0 %v4504_v41  ;;  %3542 = vmatpush3.msra.mxu1 %v4504_v41 }
 0x800   :  { %3508 = vmatprep.subr.mxu0 %v3713_v0  ;;  %3543 = vmatprep.subr.mxu1 %v3713_v0 }
 0x801   :  { %3509 = vmatpush3.msra.mxu0 %v4513_v42  ;;  %3544 = vmatpush3.msra.mxu1 %v4513_v42 }
 0x802   :  { %3510 = vmatprep.subr.mxu0 %v3713_v0  ;;  %3545 = vmatprep.subr.mxu1 %v3713_v0 }
 0x803   :  { %3511 = vmatpush3.msra.mxu0 %v4522_v43  ;;  %3546 = vmatpush3.msra.mxu1 %v4522_v43 }
 0x804   :  { %3512 = vmatprep.subr.mxu0 %v3713_v0  ;;  %3547 = vmatprep.subr.mxu1 %v3713_v0 }
 0x805   :  { %3513 = vmatpush3.msra.mxu0 %v4531_v44  ;;  %3548 = vmatpush3.msra.mxu1 %v4531_v44 }
 0x806   :  { %3514 = vmatprep.subr.mxu0 %v3713_v0  ;;  %3549 = vmatprep.subr.mxu1 %v3713_v0 }
 0x807   :  { %3515 = vmatpush3.msra.mxu0 %v4540_v45  ;;  %3516 = vmatprep.mubr.msk.f32.mxu0 %vm3714_vm0, %v3713_v0 }
 0x808   :  { %3550 = vmatpush3.msra.mxu1 %v4540_v45  ;;  %3551 = vmatprep.mubr.msk.f32.mxu1 %vm3714_vm0, %v3713_v0 }
 0x809   :  { %3554 = vmatprep.subr.mxu0 %v3713_v0  ;;  %3589 = vmatprep.subr.mxu1 %v3713_v0 }
 0x8a8   :  { %v1623_v20 = vpop.f32.mrf.mxu0  ;;  %v1698_v21 = vpop.f32.mrf.mxu1 }
 0x8a9   :  { %v1624_v13 = vadd.f32 %v4635_v59, %v1623_v20  ;;  %v1699_v14 = vadd.f32 %v4635_v59, %v1698_v21 }
 0x8aa   :  { %v3448_v46 = vpop.f32.mrf.mxu0  ;;  %v3483_v47 = vpop.f32.mrf.mxu1 }
 0x8ab   :  { %v1627_v48 = vmax.f32 %v1624_v13, 0.0  ;;  %v1702_v49 = vmax.f32 %v1699_v14, 0.0 }
 0x8ad   :  { %v1628_v52 = vadd.f32 %v2219_v50, %v1627_v48  ;;  %v1703_v53 = vadd.f32 %v2222_v51, %v1702_v49 }
 0x8af   :  { %2220 = vst [vmem:[%s5063_s3 + $0x30] sm:$0xff] %v1628_v52  ;;  %2223 = vst [vmem:[%s5063_s3 + $0x38] sm:$0xff] %v1703_v53  ;;  %3517 = vmatmul.mubr.f32.vlgmr.msra.gmra.mxu0 %v1628_v52  ;;  %3552 = vmatmul.mubr.f32.vlgmr.msra.gmra.mxu1 %v1703_v53 }
 0x8b0   :  { %3555 = vmatpush3.msra.mxu0 %v4405_v15  ;;  %3590 = vmatpush3.msra.mxu1 %v4405_v15 }
 0x8b1   :  { %3556 = vmatprep.subr.mxu0 %v3713_v0  ;;  %3591 = vmatprep.subr.mxu1 %v3713_v0 }
 0x8b2   :  { %3557 = vmatpush3.msra.mxu0 %v4414_v16  ;;  %3592 = vmatpush3.msra.mxu1 %v4414_v16 }
 0x8b3   :  { %3558 = vmatprep.subr.mxu0 %v3713_v0  ;;  %3593 = vmatprep.subr.mxu1 %v3713_v0 }
 0x8b4   :  { %3559 = vmatpush3.msra.mxu0 %v4423_v17  ;;  %3594 = vmatpush3.msra.mxu1 %v4423_v17 }
 0x8b5   :  { %3560 = vmatprep.subr.mxu0 %v3713_v0  ;;  %3595 = vmatprep.subr.mxu1 %v3713_v0 }
 0x8b6   :  { %3561 = vmatpush3.msra.mxu0 %v4432_v18  ;;  %3596 = vmatpush3.msra.mxu1 %v4432_v18 }
 0x8b7   :  { %3562 = vmatprep.subr.mxu0 %v3713_v0  ;;  %3597 = vmatprep.subr.mxu1 %v3713_v0 }
 0x8b8   :  { %3563 = vmatpush3.msra.mxu0 %v4441_v34  ;;  %3598 = vmatpush3.msra.mxu1 %v4441_v34 }
 0x8b9   :  { %3564 = vmatprep.subr.mxu0 %v3713_v0  ;;  %3599 = vmatprep.subr.mxu1 %v3713_v0 }
 0x8ba   :  { %3565 = vmatpush3.msra.mxu0 %v4450_v35  ;;  %3600 = vmatpush3.msra.mxu1 %v4450_v35 }
 0x8bb   :  { %3566 = vmatprep.subr.mxu0 %v3713_v0  ;;  %3601 = vmatprep.subr.mxu1 %v3713_v0 }
 0x8bc   :  { %3567 = vmatpush3.msra.mxu0 %v4459_v36  ;;  %3602 = vmatpush3.msra.mxu1 %v4459_v36 }
 0x8bd   :  { %3568 = vmatprep.subr.mxu0 %v3713_v0  ;;  %3603 = vmatprep.subr.mxu1 %v3713_v0 }
 0x8be   :  { %3569 = vmatpush3.msra.mxu0 %v4468_v37  ;;  %3604 = vmatpush3.msra.mxu1 %v4468_v37 }
 0x8bf   :  { %3570 = vmatprep.subr.mxu0 %v3713_v0  ;;  %3605 = vmatprep.subr.mxu1 %v3713_v0 }
 0x8c0   :  { %3571 = vmatpush3.msra.mxu0 %v4477_v38  ;;  %3606 = vmatpush3.msra.mxu1 %v4477_v38 }
 0x8c1   :  { %3572 = vmatprep.subr.mxu0 %v3713_v0  ;;  %3607 = vmatprep.subr.mxu1 %v3713_v0 }
 0x8c2   :  { %3573 = vmatpush3.msra.mxu0 %v4486_v39  ;;  %3608 = vmatpush3.msra.mxu1 %v4486_v39 }
 0x8c3   :  { %3574 = vmatprep.subr.mxu0 %v3713_v0  ;;  %3609 = vmatprep.subr.mxu1 %v3713_v0 }
 0x8c4   :  { %3575 = vmatpush3.msra.mxu0 %v4495_v40  ;;  %3610 = vmatpush3.msra.mxu1 %v4495_v40 }
 0x8c5   :  { %3576 = vmatprep.subr.mxu0 %v3713_v0  ;;  %3611 = vmatprep.subr.mxu1 %v3713_v0 }
 0x8c6   :  { %3577 = vmatpush3.msra.mxu0 %v4504_v41  ;;  %3612 = vmatpush3.msra.mxu1 %v4504_v41 }
 0x8c7   :  { %3578 = vmatprep.subr.mxu0 %v3713_v0  ;;  %3613 = vmatprep.subr.mxu1 %v3713_v0 }
 0x8c8   :  { %3579 = vmatpush3.msra.mxu0 %v4513_v42  ;;  %3614 = vmatpush3.msra.mxu1 %v4513_v42 }
 0x8c9   :  { %3580 = vmatprep.subr.mxu0 %v3713_v0  ;;  %3615 = vmatprep.subr.mxu1 %v3713_v0 }
 0x8ca   :  { %3581 = vmatpush3.msra.mxu0 %v4522_v43  ;;  %3616 = vmatpush3.msra.mxu1 %v4522_v43 }
 0x8cb   :  { %3582 = vmatprep.subr.mxu0 %v3713_v0  ;;  %3617 = vmatprep.subr.mxu1 %v3713_v0 }
 0x8cc   :  { %3583 = vmatpush3.msra.mxu0 %v4531_v44  ;;  %3618 = vmatpush3.msra.mxu1 %v4531_v44 }
 0x8cd   :  { %3584 = vmatprep.subr.mxu0 %v3713_v0  ;;  %3619 = vmatprep.subr.mxu1 %v3713_v0 }
 0x8ce   :  { %3585 = vmatpush3.msra.mxu0 %v4540_v45  ;;  %3586 = vmatprep.mubr.msk.f32.mxu0 %vm3714_vm0, %v3713_v0 }
 0x8cf   :  { %3620 = vmatpush3.msra.mxu1 %v4540_v45  ;;  %3621 = vmatprep.mubr.msk.f32.mxu1 %vm3714_vm0, %v3713_v0 }
 0x8d0   :  { %3624 = vmatprep.subr.mxu0 %v3713_v0  ;;  %3659 = vmatprep.subr.mxu1 %v3713_v0 }
 0x96f   :  { %v1773_v54 = vpop.f32.mrf.mxu0  ;;  %v1848_v55 = vpop.f32.mrf.mxu1 }
 0x970   :  { %v1774_v56 = vadd.f32 %v4635_v59, %v1773_v54  ;;  %v1849_v57 = vadd.f32 %v4635_v59, %v1848_v55 }
 0x971   :  { %v3518_v19 = vpop.f32.mrf.mxu0  ;;  %v3553_v58 = vpop.f32.mrf.mxu1 }
 0x972   :  { %v1777_v60 = vmax.f32 %v1774_v56, 0.0  ;;  %v1852_v61 = vmax.f32 %v1849_v57, 0.0 }
 0x974   :  { %v1778_v5 = vadd.f32 %v2225_v62, %v1777_v60  ;;  %v1853_v6 = vadd.f32 %v2228_v63, %v1852_v61 }
 0x976   :  { %2226 = vst [vmem:[%s5063_s3 + $0x20] sm:$0xff] %v1778_v5  ;;  %2229 = vst [vmem:[%s5063_s3 + $0x28] sm:$0xff] %v1853_v6  ;;  %3587 = vmatmul.mubr.f32.vlgmr.msra.gmra.mxu0 %v1778_v5  ;;  %3622 = vmatmul.mubr.f32.vlgmr.msra.gmra.mxu1 %v1853_v6 }
 0x977   :  { %3625 = vmatpush3.msra.mxu0 %v4405_v15  ;;  %3660 = vmatpush3.msra.mxu1 %v4405_v15 }
 0x978   :  { %3626 = vmatprep.subr.mxu0 %v3713_v0  ;;  %3661 = vmatprep.subr.mxu1 %v3713_v0 }
 0x979   :  { %3627 = vmatpush3.msra.mxu0 %v4414_v16  ;;  %3662 = vmatpush3.msra.mxu1 %v4414_v16 }
 0x97a   :  { %3628 = vmatprep.subr.mxu0 %v3713_v0  ;;  %3663 = vmatprep.subr.mxu1 %v3713_v0 }
 0x97b   :  { %3629 = vmatpush3.msra.mxu0 %v4423_v17  ;;  %3664 = vmatpush3.msra.mxu1 %v4423_v17 }
 0x97c   :  { %3630 = vmatprep.subr.mxu0 %v3713_v0  ;;  %3665 = vmatprep.subr.mxu1 %v3713_v0 }
 0x97d   :  { %3631 = vmatpush3.msra.mxu0 %v4432_v18  ;;  %3666 = vmatpush3.msra.mxu1 %v4432_v18 }
 0x97e   :  { %3632 = vmatprep.subr.mxu0 %v3713_v0  ;;  %3667 = vmatprep.subr.mxu1 %v3713_v0 }
 0x97f   :  { %3633 = vmatpush3.msra.mxu0 %v4441_v34  ;;  %3668 = vmatpush3.msra.mxu1 %v4441_v34 }
 0x980   :  { %3634 = vmatprep.subr.mxu0 %v3713_v0  ;;  %3669 = vmatprep.subr.mxu1 %v3713_v0 }
 0x981   :  { %3635 = vmatpush3.msra.mxu0 %v4450_v35  ;;  %3670 = vmatpush3.msra.mxu1 %v4450_v35 }
 0x982   :  { %3636 = vmatprep.subr.mxu0 %v3713_v0  ;;  %3671 = vmatprep.subr.mxu1 %v3713_v0 }
 0x983   :  { %3637 = vmatpush3.msra.mxu0 %v4459_v36  ;;  %3672 = vmatpush3.msra.mxu1 %v4459_v36 }
 0x984   :  { %3638 = vmatprep.subr.mxu0 %v3713_v0  ;;  %3673 = vmatprep.subr.mxu1 %v3713_v0 }
 0x985   :  { %3639 = vmatpush3.msra.mxu0 %v4468_v37  ;;  %3674 = vmatpush3.msra.mxu1 %v4468_v37 }
 0x986   :  { %3640 = vmatprep.subr.mxu0 %v3713_v0  ;;  %3675 = vmatprep.subr.mxu1 %v3713_v0 }
 0x987   :  { %3641 = vmatpush3.msra.mxu0 %v4477_v38  ;;  %3676 = vmatpush3.msra.mxu1 %v4477_v38  ;;  %v2231_v38 = vld [vmem:[%s5063_s3 + $0x10] sm:$0xff] }
 0x988   :  { %3642 = vmatprep.subr.mxu0 %v3713_v0  ;;  %3677 = vmatprep.subr.mxu1 %v3713_v0 }
 0x989   :  { %3643 = vmatpush3.msra.mxu0 %v4486_v39  ;;  %3678 = vmatpush3.msra.mxu1 %v4486_v39  ;;  %v2234_v39 = vld [vmem:[%s5063_s3 + $0x18] sm:$0xff] }
 0x98a   :  { %3644 = vmatprep.subr.mxu0 %v3713_v0  ;;  %3679 = vmatprep.subr.mxu1 %v3713_v0 }
 0x98b   :  { %3645 = vmatpush3.msra.mxu0 %v4495_v40  ;;  %3680 = vmatpush3.msra.mxu1 %v4495_v40 }
 0x98c   :  { %3646 = vmatprep.subr.mxu0 %v3713_v0  ;;  %3681 = vmatprep.subr.mxu1 %v3713_v0 }
 0x98d   :  { %3647 = vmatpush3.msra.mxu0 %v4504_v41  ;;  %3682 = vmatpush3.msra.mxu1 %v4504_v41 }
 0x98e   :  { %3648 = vmatprep.subr.mxu0 %v3713_v0  ;;  %3683 = vmatprep.subr.mxu1 %v3713_v0 }
 0x98f   :  { %3649 = vmatpush3.msra.mxu0 %v4513_v42  ;;  %3684 = vmatpush3.msra.mxu1 %v4513_v42 }
 0x990   :  { %3650 = vmatprep.subr.mxu0 %v3713_v0  ;;  %3685 = vmatprep.subr.mxu1 %v3713_v0 }
 0x991   :  { %3651 = vmatpush3.msra.mxu0 %v4522_v43  ;;  %3686 = vmatpush3.msra.mxu1 %v4522_v43 }
 0x992   :  { %3652 = vmatprep.subr.mxu0 %v3713_v0  ;;  %3687 = vmatprep.subr.mxu1 %v3713_v0 }
 0x993   :  { %3653 = vmatpush3.msra.mxu0 %v4531_v44  ;;  %3688 = vmatpush3.msra.mxu1 %v4531_v44 }
 0x994   :  { %3654 = vmatprep.subr.mxu0 %v3713_v0  ;;  %3689 = vmatprep.subr.mxu1 %v3713_v0 }
 0x995   :  { %3655 = vmatpush3.msra.mxu0 %v4540_v45  ;;  %3656 = vmatprep.mubr.msk.f32.mxu0 %vm3714_vm0, %v3713_v0 }
 0x996   :  { %3690 = vmatpush3.msra.mxu1 %v4540_v45  ;;  %3691 = vmatprep.mubr.msk.f32.mxu1 %vm3714_vm0, %v3713_v0  ;;  %v2006_v45 = vld [vmem:[%s5063_s3] sm:$0xff] }
 0xa36   :  { %v1923_v15 = vpop.f32.mrf.mxu0  ;;  %v1998_v16 = vpop.f32.mrf.mxu1 }
 0xa37   :  { %v1924_v17 = vadd.f32 %v4635_v59, %v1923_v15  ;;  %v1999_v18 = vadd.f32 %v4635_v59, %v1998_v16 }
 0xa38   :  { %v3588_v34 = vpop.f32.mrf.mxu0  ;;  %v3623_v35 = vpop.f32.mrf.mxu1 }
 0xa39   :  { %v1927_v36 = vmax.f32 %v1924_v17, 0.0  ;;  %v2002_v37 = vmax.f32 %v1999_v18, 0.0 }
 0xa3b   :  { %v1928_v40 = vadd.f32 %v2231_v38, %v1927_v36  ;;  %v2003_v0 = vadd.f32 %v2234_v39, %v2002_v37 }
 0xa3d   :  { %2232 = vst [vmem:[%s5063_s3 + $0x10] sm:$0xff] %v1928_v40  ;;  %2235 = vst [vmem:[%s5063_s3 + $0x18] sm:$0xff] %v2003_v0  ;;  %3657 = vmatmul.mubr.f32.vlgmr.msra.gmra.mxu0 %v1928_v40  ;;  %3692 = vmatmul.mubr.f32.vlgmr.msra.gmra.mxu1 %v2003_v0 }
 0xafd   :  { %v2073_v41 = vpop.f32.mrf.mxu0  ;;  %v2148_v42 = vpop.f32.mrf.mxu1 }
 0xafe   :  { %v2074_v43 = vadd.f32 %v4635_v59, %v2073_v41  ;;  %v2149_v44 = vadd.f32 %v4635_v59, %v2148_v42 }
 0xaff   :  { %v3658_v23 = vpop.f32.mrf.mxu0  ;;  %v3693_v24 = vpop.f32.mrf.mxu1 }
 0xb00   :  { %v2077_v25 = vmax.f32 %v2074_v43, 0.0  ;;  %v2152_v26 = vmax.f32 %v2149_v44, 0.0 }
 0xb02   :  { %v2078_v27 = vadd.f32 %v2077_v25, %v2006_v45  ;;  %v2153_v28 = vadd.f32 %v2152_v26, %v2081_v22 }
 0xb04   :  { %2079 = vst [vmem:[%s5063_s3] sm:$0xff] %v2078_v27  ;;  %2154 = vst [vmem:[%s5063_s3 + $0x8] sm:$0xff] %v2153_v28 }

</bundles_post_ra>
